<compile_context>
chip_gen: v7x
topology: tpu7x:2x2x1
jax: 0.10.0
libtpu: 0.0.40
codegen_flags: <defaults>
</compile_context>

<pallas_src>
import functools
import numpy as np

import jax
import jax.numpy as jnp
from jax import lax
from jax.experimental import pallas as pl
from jax.experimental.pallas import tpu as pltpu

VERY_SMALL_NUMBER = 1e-12
NEG_INF = -1e20


# ----------------------------------------------------------------------------
# Fused graph-path kernel:
#   ctx_linear -> GraphLearner(weighted_cosine) -> learn_graph -> GCN x2
#   -> graph_maxpool -> linear_hidden        (single grid=(1,) pallas_call)
# ----------------------------------------------------------------------------
def _fused_graph_kernel(ctx_ref, a1_ref, a2_ref, x_ref, wp_ref, mrow_ref,
                        mcol_ref, init_ref, wctx_ref, wa1_ref, wa2_ref, cb_ref,
                        w0_ref, w1_ref, lhw_ref, lhb_ref,
                        ivec_ref, raw_ref, adj_ref, onode_ref, hid_ref,
                        *, batch, seq, num_pers, eps, skip):
    bf16 = jnp.bfloat16
    B, S, P = batch, seq, num_pers

    # --- ctx_linear (+ReLU): ctx part hoisted over the whole batch; the arg1 /
    #     arg2 contributions are per-batch (B, E) matmuls broadcast over S
    #     (no (B,S,3E) concat / repeat materialized anywhere).
    ivec2d = jnp.dot(ctx_ref[...].astype(bf16), wctx_ref[...].astype(bf16),
                     preferred_element_type=jnp.float32)               # (B*S, E)
    argc = (jnp.dot(a1_ref[...].astype(bf16), wa1_ref[...].astype(bf16),
                    preferred_element_type=jnp.float32)
            + jnp.dot(a2_ref[...].astype(bf16), wa2_ref[...].astype(bf16),
                      preferred_element_type=jnp.float32)
            + cb_ref[...])                                             # (B, E)
    ivec = jnp.maximum(ivec2d.reshape(B, S, -1) + argc[:, None, :], 0.0)
    ivec_ref[...] = ivec

    # --- weighted-cosine GraphLearner: fold (batch, perspective) into one
    #     batched matmul of size (B*P, S, Din).
    x = x_ref[...]                                                     # (B, S, Din)
    wp = wp_ref[...]                                                   # (P, Din)
    xf = (x[:, None, :, :] * wp[None, :, None, :]).reshape(B * P, S, -1)
    ss = jnp.sum(xf * xf, axis=-1, keepdims=True)
    xn = xf * lax.rsqrt(jnp.maximum(ss, 1e-24))                        # F.normalize(dim=-1)
    sim = jnp.einsum('nsd,ntd->nst', xn, xn,
                     preferred_element_type=jnp.float32)               # (B*P, S, S)
    attn = jnp.sum(sim.reshape(B, P, S, S), axis=1) * (1.0 / P)        # mean over persp.
    # masked_fill with markoff_value = 0 on masked columns / rows
    attn = attn * mcol_ref[...] * mrow_ref[...]
    # epsilon neighbourhood (markoff 0); clamped normalize => no NaN,
    # so torch.nan_to_num is a no-op and is dropped.
    attn = jnp.where(attn > eps, attn, 0.0)
    raw_ref[...] = attn

    # learn_graph row-normalization + graph_skip_conn mixing (all batched)
    denom = jnp.maximum(jnp.sum(attn, axis=-1, keepdims=True), VERY_SMALL_NUMBER)
    adj = skip * init_ref[...] + (1.0 - skip) * (attn / denom)
    adj_ref[...] = adj

    # --- 2-layer GCN (GraphConvolution, bias=False): out = adj @ (x @ W)
    #     Weight applications hoisted to (B*S, .) matmuls; adj@support batched.
    adj_b = adj.astype(bf16)
    sup0 = jnp.dot(ivec.reshape(B * S, -1).astype(bf16), w0_ref[...].astype(bf16),
                   preferred_element_type=jnp.float32).reshape(B, S, -1)
    nv = jnp.maximum(jnp.einsum('bst,bth->bsh', adj_b, sup0.astype(bf16),
                                preferred_element_type=jnp.float32), 0.0)
    sup1 = jnp.dot(nv.reshape(B * S, -1).astype(bf16), w1_ref[...].astype(bf16),
                   preferred_element_type=jnp.float32).reshape(B, S, -1)
    on = jnp.einsum('bst,bto->bso', adj_b, sup1.astype(bf16),
                    preferred_element_type=jnp.float32)                # (B, S, GO)
    onode_ref[...] = on

    # --- graph_maxpool over nodes (matches torch: no node mask), then linear_hidden
    pool = jnp.max(on, axis=1)                                         # (B, GO)
    hid = jnp.dot(pool.astype(bf16), lhw_ref[...].astype(bf16),
                  preferred_element_type=jnp.float32) + lhb_ref[...]
    hid_ref[...] = jnp.maximum(hid, 0.0)


def fused_graph_pallas(context_vec, arg1, arg2, raw_x, wpers, mask, init_adj,
                       params, eps, skip):
    B, S, Din = raw_x.shape
    E = context_vec.shape[-1]
    GH = params['gcn_w0'].shape[1]
    GO = params['gcn_w1'].shape[1]
    P = wpers.shape[0]

    ctx2d = context_vec.reshape(B * S, E)
    mrow = mask.reshape(B, S, 1)
    mcol = mask.reshape(B, 1, S)
    w_ctx = params['ctx_w'][:E]          # cat order: [context, arg1, arg2]
    w_a1 = params['ctx_w'][E:2 * E]
    w_a2 = params['ctx_w'][2 * E:]

    kernel = functools.partial(_fused_graph_kernel, batch=B, seq=S,
                               num_pers=P, eps=float(eps), skip=float(skip))

    ivec, raw_adj, cur_adj, out_node, hid = pl.pallas_call(
        kernel,
        out_shape=(jax.ShapeDtypeStruct((B, S, E), jnp.float32),
                   jax.ShapeDtypeStruct((B, S, S), jnp.float32),
                   jax.ShapeDtypeStruct((B, S, S), jnp.float32),
                   jax.ShapeDtypeStruct((B, S, GO), jnp.float32),
                   jax.ShapeDtypeStruct((B, GO), jnp.float32)),
        grid=(1,),
        in_specs=[pl.BlockSpec((B * S, E), lambda i: (0, 0)),
                  pl.BlockSpec((B, E), lambda i: (0, 0)),
                  pl.BlockSpec((B, E), lambda i: (0, 0)),
                  pl.BlockSpec((B, S, Din), lambda i: (0, 0, 0)),
                  pl.BlockSpec((P, Din), lambda i: (0, 0)),
                  pl.BlockSpec((B, S, 1), lambda i: (0, 0, 0)),
                  pl.BlockSpec((B, 1, S), lambda i: (0, 0, 0)),
                  pl.BlockSpec((B, S, S), lambda i: (0, 0, 0)),
                  pl.BlockSpec((E, E), lambda i: (0, 0)),
                  pl.BlockSpec((E, E), lambda i: (0, 0)),
                  pl.BlockSpec((E, E), lambda i: (0, 0)),
                  pl.BlockSpec((1, E), lambda i: (0, 0)),
                  pl.BlockSpec((E, GH), lambda i: (0, 0)),
                  pl.BlockSpec((GH, GO), lambda i: (0, 0)),
                  pl.BlockSpec((GO, GO), lambda i: (0, 0)),
                  pl.BlockSpec((1, GO), lambda i: (0, 0))],
        out_specs=(pl.BlockSpec((B, S, E), lambda i: (0, 0, 0)),
                   pl.BlockSpec((B, S, S), lambda i: (0, 0, 0)),
                   pl.BlockSpec((B, S, S), lambda i: (0, 0, 0)),
                   pl.BlockSpec((B, S, GO), lambda i: (0, 0, 0)),
                   pl.BlockSpec((B, GO), lambda i: (0, 0))),
        compiler_params=pltpu.CompilerParams(dimension_semantics=("arbitrary",)),
    )(ctx2d, arg1, arg2, raw_x, wpers, mrow, mcol, init_adj,
      w_ctx, w_a1, w_a2, params['ctx_b'].reshape(1, E),
      params['gcn_w0'], params['gcn_w1'],
      params['lh_w'], params['lh_b'].reshape(1, GO))
    return ivec, raw_adj, cur_adj, out_node, hid


# ----------------------------------------------------------------------------
# Fused linear_out + SelectiveAttention + dim2rel + diagonal kernel (batched)
# ----------------------------------------------------------------------------
def _att_rel_kernel(bags_ref, mask_ref, low_ref, lob_ref, relT_ref, bias_ref,
                    o_ref, *, num_bags, max_bag):
    bf16 = jnp.bfloat16
    # linear_out + ReLU over ALL bag sentences at once: (NB*MB, GO) @ (GO, R)
    xb = jnp.maximum(
        jnp.dot(bags_ref[...].astype(bf16), low_ref[...].astype(bf16),
                preferred_element_type=jnp.float32) + lob_ref[...], 0.0)
    # per-relation attention scores: (NB*MB, R) @ (R, NR)
    s = jnp.dot(xb.astype(bf16), relT_ref[...].astype(bf16),
                preferred_element_type=jnp.float32)
    s3 = s.reshape(num_bags, max_bag, -1)                 # MB padded to 8 => aligned
    sm = jnp.where(mask_ref[...] > 0.0, s3, -1e30)        # mask padded sentences
    sm = sm - jnp.max(sm, axis=1, keepdims=True)
    e = jnp.exp(sm)
    alpha = e / jnp.sum(e, axis=1, keepdims=True)         # softmax over bag sentences
    # diag(dim2rel(sum_m alpha[m,:,None]*x[m]))[j] == sum_m alpha[m,j]*s[m,j]
    o_ref[...] = jnp.sum(alpha * s3, axis=1) + bias_ref[...]   # single (NB, NR) store


def att_rel_pallas(bags2d, bag_mask, lo_w, lo_b, relT, d2r_b):
    NB, MB, _ = bag_mask.shape
    GO = bags2d.shape[1]
    R = lo_w.shape[1]
    NR = relT.shape[1]
    return pl.pallas_call(
        functools.partial(_att_rel_kernel, num_bags=NB, max_bag=MB),
        out_shape=jax.ShapeDtypeStruct((NB, NR), jnp.float32),
        grid=(1,),
        in_specs=[pl.BlockSpec((NB * MB, GO), lambda i: (0, 0)),
                  pl.BlockSpec((NB, MB, 1), lambda i: (0, 0, 0)),
                  pl.BlockSpec((GO, R), lambda i: (0, 0)),
                  pl.BlockSpec((1, R), lambda i: (0, 0)),
                  pl.BlockSpec((R, NR), lambda i: (0, 0)),
                  pl.BlockSpec((1, NR), lambda i: (0, 0))],
        out_specs=pl.BlockSpec((NB, NR), lambda i: (0, 0)),
        compiler_params=pltpu.CompilerParams(dimension_semantics=("arbitrary",)),
    )(bags2d, bag_mask, lo_w, lo_b.reshape(1, R), relT, d2r_b.reshape(1, NR))


# ----------------------------------------------------------------------------
# Plain-JAX glue (sequential recurrence, top_k, padding, mention merging)
# ----------------------------------------------------------------------------
# TODO(synk): LSTM recurrence (pack_padded_sequence) runs in plain JAX via one
# merged fwd/bwd lax.scan; the sequential recurrence has no clean Pallas form.
def bilstm_sum(x, p, lens):
    """Bidirectional single-layer LSTM, directions summed (action='sum').

    Input projection hoisted to one (B*S, Din)@(Din, 8H) bf16 matmul; both
    directions run in a single scan over a (2, B, H) stacked state, with
    pack_padded_sequence semantics (gated state updates, zeroed pad outputs).
    """
    B, S, Din = x.shape
    H = p['Whh_f'].shape[1]
    bf16 = jnp.bfloat16

    wih_cat = jnp.concatenate([p['Wih_f'], p['Wih_b']], axis=0).T       # (Din, 8H)
    gx = jnp.dot(x.reshape(B * S, Din).astype(bf16), wih_cat.astype(bf16),
                 preferred_element_type=jnp.float32).reshape(B, S, 8 * H)
    gx = jnp.swapaxes(gx, 0, 1)                                         # (S, B, 8H)
    gx_f = gx[..., :4 * H] + (p['bih_f'] + p['bhh_f'])
    gx_b = gx[::-1, :, 4 * H:] + (p['bih_b'] + p['bhh_b'])              # time-reversed
    gx_stack = jnp.stack([gx_f, gx_b], axis=1)                          # (S, 2, B, 4H)

    t = jnp.arange(S)
    valid_f = (t[:, None] < lens[None, :]).astype(jnp.float32)          # (S, B)
    valid_b = ((S - 1 - t)[:, None] < lens[None, :]).astype(jnp.float32)
    valid = jnp.stack([valid_f, valid_b], axis=1)[..., None]            # (S, 2, B, 1)

    whhT = jnp.stack([p['Whh_f'].T, p['Whh_b'].T], axis=0)              # (2, H, 4H)

    def step(carry, inp):
        h, c = carry                                                     # (2, B, H)
        g, v = inp
        gates = g + jnp.einsum('dbe,def->dbf', h, whhT)
        i = jax.nn.sigmoid(gates[..., 0 * H:1 * H])
        f = jax.nn.sigmoid(gates[..., 1 * H:2 * H])
        gg = jnp.tanh(gates[..., 2 * H:3 * H])
        o = jax.nn.sigmoid(gates[..., 3 * H:4 * H])
        c_new = f * c + i * gg
        h_new = o * jnp.tanh(c_new)
        c = jnp.where(v > 0, c_new, c)       # freeze state on padded steps
        h = jnp.where(v > 0, h_new, h)
        return (h, c), h_new * v             # padded outputs are 0 (pad_packed)

    h0 = jnp.zeros((2, B, H), jnp.float32)
    c0 = jnp.zeros((2, B, H), jnp.float32)
    (hT, cT), hs = lax.scan(step, (h0, c0), (gx_stack, valid))
    out = jnp.swapaxes(hs[:, 0] + hs[::-1, 1], 0, 1)                     # (B, S, H)
    return out, (hT[0] + hT[1], cT[0] + cT[1])


def create_mask(lens, S):
    return (jnp.arange(S)[None, :] < lens[:, None]).astype(jnp.float32)


# TODO(synk): torch.topk of the kNN init graph has no clean Pallas equivalent;
# done with lax.top_k in plain JAX. batch_normalize_adj is pure elementwise
# row/col scaling (no diag construction, no (S,S)@(S,S) matmuls).
def compute_init_adj(feats, knn, mask):
    B, S, _ = feats.shape
    att = jnp.einsum('bsd,btd->bst', feats, feats)
    att = jnp.where(mask[:, None, :] > 0, att, NEG_INF)     # mask columns
    att = jnp.where(mask[:, :, None] > 0, att, NEG_INF)     # mask rows
    _, idx = lax.top_k(att, knn)                            # (B, S, knn)
    adj = jnp.sum(jax.nn.one_hot(idx, S, dtype=jnp.float32), axis=-2)   # binarized
    # batch_normalize_adj: D^{-1/2} (masked) applied on both sides of adj^T
    d = lax.rsqrt(jnp.maximum(adj.sum(1), VERY_SMALL_NUMBER)) * mask    # (B, S)
    return d[:, :, None] * jnp.swapaxes(adj, -1, -2) * d[:, None, :]


def merge_tokens(enc_seq, mentions):
    B, S, E = enc_seq.shape
    w_ids = jnp.arange(S)[None, :]
    idx1 = ((w_ids >= mentions[:, 0:1]) & (w_ids <= mentions[:, 1:2])).astype(jnp.float32)
    idx2 = ((w_ids >= mentions[:, 2:3]) & (w_ids <= mentions[:, 3:4])).astype(jnp.float32)
    arg1 = jnp.einsum('bs,bse->be', idx1, enc_seq) / jnp.sum(idx1, -1, keepdims=True)
    arg2 = jnp.einsum('bs,bse->be', idx2, enc_seq) / jnp.sum(idx2, -1, keepdims=True)
    return arg1, arg2


def pad_by_bags(x, bag_sizes, pad_to=8):
    """Emulates pad_sequence(torch.split(x, bag_sizes), batch_first=True).

    MB is padded up to a multiple of 8 so the in-kernel (NB*MB, .) -> (NB, MB, .)
    reshape is sublane-tile aligned; the extra rows are masked in the softmax.
    """
    bag_sizes = list(bag_sizes)
    max_bag = max(int(np.ceil(max(bag_sizes) / pad_to)) * pad_to, pad_to)
    offs = np.concatenate([[0], np.cumsum(bag_sizes)[:-1]])
    idx = offs[:, None] + np.arange(max_bag)[None, :]
    m = np.arange(max_bag)[None, :] < np.array(bag_sizes)[:, None]
    idx = np.where(m, idx, 0)
    mask = jnp.asarray(m, jnp.float32)[:, :, None]
    bags = x[jnp.asarray(idx)] * mask
    return bags, mask


# ----------------------------------------------------------------------------
# TextGraph forward
# ----------------------------------------------------------------------------
def text_graph_forward(params, raw_context_vec, batch, cfg):
    lens = batch['sent_len']
    mentions = batch['mentions']
    bag_sizes = batch['bag_size']                           # static python tuple
    B, S, Din = raw_context_vec.shape
    E = cfg['enc_dim']

    # --- prepare_init_graph ---
    node_mask = create_mask(lens, S)
    context_vec, (hidden, cell) = bilstm_sum(raw_context_vec, params['lstm'], lens)
    init_adj = compute_init_adj(raw_context_vec, cfg['knn_size'], node_mask)

    # --- mention merging; ctx_linear is fused into the graph kernel
    #     (no (B,S,3E) concat / repeat is materialized) ---
    arg1, arg2 = merge_tokens(context_vec, mentions)

    save_init_adj = init_adj
    raw_node_vec = raw_context_vec

    # reconstruction=False branch
    mu_ = jnp.zeros((B, cfg['latent_dim']), jnp.float32)
    kld = jnp.zeros((1,), jnp.float32)
    save_reco_adj = init_adj

    # --- fused: ctx_linear -> learn_graph -> GCN x2 -> maxpool -> linear_hidden ---
    init_node_vec, cur_raw_adj, cur_adj, output_node, hid = fused_graph_pallas(
        context_vec, arg1, arg2, raw_node_vec, params['gl_w'], node_mask,
        init_adj, params, eps=cfg['graph_learn_epsilon'], skip=cfg['graph_skip_conn'])

    # --- compute_output tail: bag padding + fused linear_out/attention/dim2rel/diag ---
    bags, bag_mask = pad_by_bags(hid, bag_sizes)                        # (NB, MB, GO)
    NB, MB, GO = bags.shape
    output = att_rel_pallas(bags.reshape(NB * MB, GO), bag_mask,
                            params['lo_w'], params['lo_b'],
                            params['rel_embed'].T, params['d2r_b'])     # (NB, num_rel)

    graph_features = (init_adj, cur_raw_adj, cur_adj, raw_node_vec,
                      init_node_vec, output_node, node_mask, lens)
    rec_features = (kld, mu_)
    return output, graph_features, rec_features, (save_init_adj, save_reco_adj)


# ----------------------------------------------------------------------------
# Deterministic parameter init
# ----------------------------------------------------------------------------
def init_params(key, cfg):
    Din, E = cfg['in_dim'], cfg['enc_dim']
    GH, GO = cfg['graph_hid_dim'], cfg['graph_out_dim']
    R, NR, P = cfg['rel_embed_dim'], cfg['num_rel'], cfg['num_pers']
    ks = jax.random.split(key, 16)
    n = lambda k, s: 0.1 * jax.random.normal(k, s, jnp.float32)
    return {
        'lstm': {
            'Wih_f': n(ks[0], (4 * E, Din)), 'Whh_f': n(ks[1], (4 * E, E)),
            'bih_f': n(ks[2], (4 * E,)), 'bhh_f': jnp.zeros((4 * E,), jnp.float32),
            'Wih_b': n(ks[3], (4 * E, Din)), 'Whh_b': n(ks[4], (4 * E, E)),
            'bih_b': n(ks[5], (4 * E,)), 'bhh_b': jnp.zeros((4 * E,), jnp.float32),
        },
        'ctx_w': n(ks[6], (3 * E, E)), 'ctx_b': jnp.zeros((E,), jnp.float32),
        'gl_w': 1.0 + n(ks[7], (P, Din)),     # weighted-cosine perspective weights
        'gcn_w0': n(ks[8], (E, GH)),
        'gcn_w1': n(ks[9], (GH, GO)),
        'lh_w': n(ks[10], (GO, GO)), 'lh_b': n(ks[11], (GO,)),
        'lo_w': n(ks[12], (GO, R)), 'lo_b': n(ks[13], (R,)),
        'rel_embed': n(ks[14], (NR, R)),      # tied to dim2rel weight
        'd2r_b': n(ks[15], (NR,)),
    }


# ----------------------------------------------------------------------------
# Main
# ----------------------------------------------------------------------------
if __name__ == "__main__":
    cfg = dict(
        in_dim=32, enc_dim=32, graph_hid_dim=32, graph_out_dim=32,
        rel_embed_dim=32, num_rel=8, latent_dim=16,
        num_pers=4, knn_size=4,
        graph_skip_conn=0.7, graph_learn_epsilon=0.0,
    )
    B, S = 4, 16
    key = jax.random.PRNGKey(0)
    k_in, k_par = jax.random.split(key, 2)

    raw_context_vec = jax.random.normal(k_in, (B, S, cfg['in_dim']), jnp.float32)
    batch = {
        'sent_len': jnp.array([16, 12, 16, 10], jnp.int32),
        'mentions': jnp.array([[1, 3, 5, 7],
                               [0, 2, 4, 6],
                               [2, 4, 8, 10],
                               [0, 1, 3, 5]], jnp.int32),
        'bag_size': (2, 2),   # static bag sizes (torch used bag_size.tolist())
    }
    params = init_params(k_par, cfg)

    output, graph_features, rec_features, adjs = text_graph_forward(
        params, raw_context_vec, batch, cfg)
    jax.block_until_ready(output)

    assert output.shape == (2, cfg['num_rel'])
    assert graph_features[2].shape == (B, S, S)                 # cur_adj
    assert graph_features[4].shape == (B, S, cfg['enc_dim'])    # init_node_vec
    assert bool(jnp.all(jnp.isfinite(output)))
    print("KERNEL_OK")
</pallas_src>

<mosaic_0001>
module attributes {stable_mosaic.version = 11 : i64} {
  func.func @_fused_graph_kernel(%arg0: i32, %arg1: memref<64x32xf32, #tpu.memory_space<vmem>>, %arg2: memref<4x32xf32, #tpu.memory_space<vmem>>, %arg3: memref<4x32xf32, #tpu.memory_space<vmem>>, %arg4: memref<4x16x32xf32, #tpu.memory_space<vmem>>, %arg5: memref<4x32xf32, #tpu.memory_space<vmem>>, %arg6: memref<4x16x1xf32, #tpu.memory_space<vmem>>, %arg7: memref<4x1x16xf32, #tpu.memory_space<vmem>>, %arg8: memref<4x16x16xf32, #tpu.memory_space<vmem>>, %arg9: memref<32x32xf32, #tpu.memory_space<vmem>>, %arg10: memref<32x32xf32, #tpu.memory_space<vmem>>, %arg11: memref<32x32xf32, #tpu.memory_space<vmem>>, %arg12: memref<1x32xf32, #tpu.memory_space<vmem>>, %arg13: memref<32x32xf32, #tpu.memory_space<vmem>>, %arg14: memref<32x32xf32, #tpu.memory_space<vmem>>, %arg15: memref<32x32xf32, #tpu.memory_space<vmem>>, %arg16: memref<1x32xf32, #tpu.memory_space<vmem>>, %arg17: memref<4x16x32xf32, #tpu.memory_space<vmem>>, %arg18: memref<4x16x16xf32, #tpu.memory_space<vmem>>, %arg19: memref<4x16x16xf32, #tpu.memory_space<vmem>>, %arg20: memref<4x16x32xf32, #tpu.memory_space<vmem>>, %arg21: memref<4x32xf32, #tpu.memory_space<vmem>>) attributes {dimension_semantics = [#tpu.dimension_semantics<arbitrary>], iteration_bounds = array<i64: 1>, scalar_prefetch = 0 : i64, scratch_operands = 0 : i64, tpu.core_type = #tpu.core_type<tc>, window_params = [{pipeline_mode = #tpu.pipeline_mode<synchronous>, transform_indices = @transform_0, window_bounds = array<i64: 64, 32>}, {pipeline_mode = #tpu.pipeline_mode<synchronous>, transform_indices = @transform_1, window_bounds = array<i64: 4, 32>}, {pipeline_mode = #tpu.pipeline_mode<synchronous>, transform_indices = @transform_2, window_bounds = array<i64: 4, 32>}, {pipeline_mode = #tpu.pipeline_mode<synchronous>, transform_indices = @transform_3, window_bounds = array<i64: 4, 16, 32>}, {pipeline_mode = #tpu.pipeline_mode<synchronous>, transform_indices = @transform_4, window_bounds = array<i64: 4, 32>}, {pipeline_mode = #tpu.pipeline_mode<synchronous>, transform_indices = @transform_5, window_bounds = array<i64: 4, 16, 1>}, {pipeline_mode = #tpu.pipeline_mode<synchronous>, transform_indices = @transform_6, window_bounds = array<i64: 4, 1, 16>}, {pipeline_mode = #tpu.pipeline_mode<synchronous>, transform_indices = @transform_7, window_bounds = array<i64: 4, 16, 16>}, {pipeline_mode = #tpu.pipeline_mode<synchronous>, transform_indices = @transform_8, window_bounds = array<i64: 32, 32>}, {pipeline_mode = #tpu.pipeline_mode<synchronous>, transform_indices = @transform_9, window_bounds = array<i64: 32, 32>}, {pipeline_mode = #tpu.pipeline_mode<synchronous>, transform_indices = @transform_10, window_bounds = array<i64: 32, 32>}, {pipeline_mode = #tpu.pipeline_mode<synchronous>, transform_indices = @transform_11, window_bounds = array<i64: 1, 32>}, {pipeline_mode = #tpu.pipeline_mode<synchronous>, transform_indices = @transform_12, window_bounds = array<i64: 32, 32>}, {pipeline_mode = #tpu.pipeline_mode<synchronous>, transform_indices = @transform_13, window_bounds = array<i64: 32, 32>}, {pipeline_mode = #tpu.pipeline_mode<synchronous>, transform_indices = @transform_14, window_bounds = array<i64: 32, 32>}, {pipeline_mode = #tpu.pipeline_mode<synchronous>, transform_indices = @transform_15, window_bounds = array<i64: 1, 32>}, {pipeline_mode = #tpu.pipeline_mode<synchronous>, transform_indices = @transform_16, window_bounds = array<i64: 4, 16, 32>}, {pipeline_mode = #tpu.pipeline_mode<synchronous>, transform_indices = @transform_17, window_bounds = array<i64: 4, 16, 16>}, {pipeline_mode = #tpu.pipeline_mode<synchronous>, transform_indices = @transform_18, window_bounds = array<i64: 4, 16, 16>}, {pipeline_mode = #tpu.pipeline_mode<synchronous>, transform_indices = @transform_19, window_bounds = array<i64: 4, 16, 32>}, {pipeline_mode = #tpu.pipeline_mode<synchronous>, transform_indices = @transform_20, window_bounds = array<i64: 4, 32>}]} {
    %c0 = arith.constant 0 : index
    %c0_0 = arith.constant 0 : index
    %0 = vector.load %arg1[%c0, %c0_0] : memref<64x32xf32, #tpu.memory_space<vmem>>, vector<64x32xf32>
    %1 = arith.truncf %0 : vector<64x32xf32> to vector<64x32xbf16>
    %c0_1 = arith.constant 0 : index
    %c0_2 = arith.constant 0 : index
    %2 = vector.load %arg9[%c0_1, %c0_2] : memref<32x32xf32, #tpu.memory_space<vmem>>, vector<32x32xf32>
    %3 = arith.truncf %2 : vector<32x32xf32> to vector<32x32xbf16>
    %cst = arith.constant dense<0.000000e+00> : vector<64x32xf32>
    %4 = tpu.matmul %1, %3, %cst {dimension_numbers = #tpu.dot_dimension_numbers<[1], [0], [0], [1], [0, 0, 1, 1], [], []>} : vector<64x32xbf16>, vector<32x32xbf16>, vector<64x32xf32> -> vector<64x32xf32>
    %c0_3 = arith.constant 0 : index
    %c0_4 = arith.constant 0 : index
    %5 = vector.load %arg2[%c0_3, %c0_4] : memref<4x32xf32, #tpu.memory_space<vmem>>, vector<4x32xf32>
    %6 = arith.truncf %5 : vector<4x32xf32> to vector<4x32xbf16>
    %c0_5 = arith.constant 0 : index
    %c0_6 = arith.constant 0 : index
    %7 = vector.load %arg10[%c0_5, %c0_6] : memref<32x32xf32, #tpu.memory_space<vmem>>, vector<32x32xf32>
    %8 = arith.truncf %7 : vector<32x32xf32> to vector<32x32xbf16>
    %cst_7 = arith.constant dense<0.000000e+00> : vector<4x32xf32>
    %9 = tpu.matmul %6, %8, %cst_7 {dimension_numbers = #tpu.dot_dimension_numbers<[1], [0], [0], [1], [0, 0, 1, 1], [], []>} : vector<4x32xbf16>, vector<32x32xbf16>, vector<4x32xf32> -> vector<4x32xf32>
    %c0_8 = arith.constant 0 : index
    %c0_9 = arith.constant 0 : index
    %10 = vector.load %arg3[%c0_8, %c0_9] : memref<4x32xf32, #tpu.memory_space<vmem>>, vector<4x32xf32>
    %11 = arith.truncf %10 : vector<4x32xf32> to vector<4x32xbf16>
    %c0_10 = arith.constant 0 : index
    %c0_11 = arith.constant 0 : index
    %12 = vector.load %arg11[%c0_10, %c0_11] : memref<32x32xf32, #tpu.memory_space<vmem>>, vector<32x32xf32>
    %13 = arith.truncf %12 : vector<32x32xf32> to vector<32x32xbf16>
    %cst_12 = arith.constant dense<0.000000e+00> : vector<4x32xf32>
    %14 = tpu.matmul %11, %13, %cst_12 {dimension_numbers = #tpu.dot_dimension_numbers<[1], [0], [0], [1], [0, 0, 1, 1], [], []>} : vector<4x32xbf16>, vector<32x32xbf16>, vector<4x32xf32> -> vector<4x32xf32>
    %15 = arith.addf %9, %14 : vector<4x32xf32>
    %c0_13 = arith.constant 0 : index
    %c0_14 = arith.constant 0 : index
    %16 = vector.load %arg12[%c0_13, %c0_14] : memref<1x32xf32, #tpu.memory_space<vmem>>, vector<1x32xf32>
    %17 = vector.broadcast %16 : vector<1x32xf32> to vector<4x32xf32>
    %18 = arith.addf %15, %17 : vector<4x32xf32>
    %19 = vector.shape_cast %4 : vector<64x32xf32> to vector<4x16x32xf32>
    %20 = vector.shape_cast %18 : vector<4x32xf32> to vector<4x1x32xf32>
    %21 = vector.broadcast %20 : vector<4x1x32xf32> to vector<4x16x32xf32>
    %22 = arith.addf %19, %21 : vector<4x16x32xf32>
    %cst_15 = arith.constant 0.000000e+00 : f32
    %23 = vector.broadcast %cst_15 : f32 to vector<4x16x32xf32>
    %24 = arith.maximumf %22, %23 : vector<4x16x32xf32>
    %c0_16 = arith.constant 0 : index
    %c0_17 = arith.constant 0 : index
    %c0_18 = arith.constant 0 : index
    %25 = vector.load %arg17[%c0_16, %c0_17, %c0_18] : memref<4x16x32xf32, #tpu.memory_space<vmem>>, vector<4x16x32xf32>
    tpu.vector_store %arg17[%c0_16, %c0_17, %c0_18], %24 {strides = array<i32>} : memref<4x16x32xf32, #tpu.memory_space<vmem>>, vector<4x16x32xf32>,
    %c0_19 = arith.constant 0 : index
    %c0_20 = arith.constant 0 : index
    %c0_21 = arith.constant 0 : index
    %26 = vector.load %arg4[%c0_19, %c0_20, %c0_21] : memref<4x16x32xf32, #tpu.memory_space<vmem>>, vector<4x16x32xf32>
    %c0_22 = arith.constant 0 : index
    %c0_23 = arith.constant 0 : index
    %27 = vector.load %arg5[%c0_22, %c0_23] : memref<4x32xf32, #tpu.memory_space<vmem>>, vector<4x32xf32>
    %28 = vector.shape_cast %26 : vector<4x16x32xf32> to vector<4x1x16x32xf32>
    %29 = vector.shape_cast %27 : vector<4x32xf32> to vector<1x4x1x32xf32>
    %30 = vector.broadcast %28 : vector<4x1x16x32xf32> to vector<4x4x16x32xf32>
    %31 = vector.broadcast %29 : vector<1x4x1x32xf32> to vector<4x4x16x32xf32>
    %32 = arith.mulf %30, %31 : vector<4x4x16x32xf32>
    %33 = vector.shape_cast %32 : vector<4x4x16x32xf32> to vector<16x16x32xf32>
    %34 = arith.mulf %33, %33 : vector<16x16x32xf32>
    %cst_24 = arith.constant dense<0.000000e+00> : vector<16x16xf32>
    %35 = vector.multi_reduction <add>, %34, %cst_24 [2] : vector<16x16x32xf32> to vector<16x16xf32>
    %36 = vector.shape_cast %35 : vector<16x16xf32> to vector<16x16x1xf32>
    %cst_25 = arith.constant 1.000000e-24 : f32
    %37 = vector.broadcast %cst_25 : f32 to vector<16x16x1xf32>
    %38 = arith.maximumf %36, %37 : vector<16x16x1xf32>
    %39 = math.rsqrt %38 : vector<16x16x1xf32>
    %40 = vector.broadcast %39 : vector<16x16x1xf32> to vector<16x16x32xf32>
    %41 = arith.mulf %33, %40 : vector<16x16x32xf32>
    "tpu.trace_start"() <{level = 10 : i32, message = "nsd,ntd->nst"}> : () -> ()
    %cst_26 = arith.constant dense<0.000000e+00> : vector<16x16x16xf32>
    %42 = tpu.matmul %41, %41, %cst_26 {dimension_numbers = #tpu.dot_dimension_numbers<[2], [2], [1], [1], [0, 0, 0, 1, 1, 1], [0], [0]>} : vector<16x16x32xf32>, vector<16x16x32xf32>, vector<16x16x16xf32> -> vector<16x16x16xf32>
    "tpu.trace_stop"() : () -> ()
    %43 = vector.shape_cast %42 : vector<16x16x16xf32> to vector<4x4x16x16xf32>
    %cst_27 = arith.constant dense<0.000000e+00> : vector<4x16x16xf32>
    %44 = vector.multi_reduction <add>, %43, %cst_27 [1] : vector<4x4x16x16xf32> to vector<4x16x16xf32>
    %cst_28 = arith.constant 2.500000e-01 : f32
    %45 = vector.broadcast %cst_28 : f32 to vector<4x16x16xf32>
    %46 = arith.mulf %44, %45 : vector<4x16x16xf32>
    %c0_29 = arith.constant 0 : index
    %c0_30 = arith.constant 0 : index
    %c0_31 = arith.constant 0 : index
    %47 = vector.load %arg7[%c0_29, %c0_30, %c0_31] : memref<4x1x16xf32, #tpu.memory_space<vmem>>, vector<4x1x16xf32>
    %48 = vector.broadcast %47 : vector<4x1x16xf32> to vector<4x16x16xf32>
    %49 = arith.mulf %46, %48 : vector<4x16x16xf32>
    %c0_32 = arith.constant 0 : index
    %c0_33 = arith.constant 0 : index
    %c0_34 = arith.constant 0 : index
    %50 = vector.load %arg6[%c0_32, %c0_33, %c0_34] : memref<4x16x1xf32, #tpu.memory_space<vmem>>, vector<4x16x1xf32>
    %51 = vector.broadcast %50 : vector<4x16x1xf32> to vector<4x16x16xf32>
    %52 = arith.mulf %49, %51 : vector<4x16x16xf32>
    %cst_35 = arith.constant 0.000000e+00 : f32
    %53 = vector.broadcast %cst_35 : f32 to vector<4x16x16xf32>
    %54 = arith.cmpf ogt, %52, %53 : vector<4x16x16xf32>
    %cst_36 = arith.constant 0.000000e+00 : f32
    %55 = vector.broadcast %cst_36 : f32 to vector<4x16x16xf32>
    %56 = arith.select %54, %52, %55 : vector<4x16x16xi1>, vector<4x16x16xf32>
    %c0_37 = arith.constant 0 : index
    %c0_38 = arith.constant 0 : index
    %c0_39 = arith.constant 0 : index
    %57 = vector.load %arg18[%c0_37, %c0_38, %c0_39] : memref<4x16x16xf32, #tpu.memory_space<vmem>>, vector<4x16x16xf32>
    tpu.vector_store %arg18[%c0_37, %c0_38, %c0_39], %56 {strides = array<i32>} : memref<4x16x16xf32, #tpu.memory_space<vmem>>, vector<4x16x16xf32>,
    %cst_40 = arith.constant dense<0.000000e+00> : vector<4x16xf32>
    %58 = vector.multi_reduction <add>, %56, %cst_40 [2] : vector<4x16x16xf32> to vector<4x16xf32>
    %59 = vector.shape_cast %58 : vector<4x16xf32> to vector<4x16x1xf32>
    %cst_41 = arith.constant 9.99999996E-13 : f32
    %60 = vector.broadcast %cst_41 : f32 to vector<4x16x1xf32>
    %61 = arith.maximumf %59, %60 : vector<4x16x1xf32>
    %c0_42 = arith.constant 0 : index
    %c0_43 = arith.constant 0 : index
    %c0_44 = arith.constant 0 : index
    %62 = vector.load %arg8[%c0_42, %c0_43, %c0_44] : memref<4x16x16xf32, #tpu.memory_space<vmem>>, vector<4x16x16xf32>
    %cst_45 = arith.constant 0.699999988 : f32
    %63 = vector.broadcast %cst_45 : f32 to vector<4x16x16xf32>
    %64 = arith.mulf %63, %62 : vector<4x16x16xf32>
    %65 = vector.broadcast %61 : vector<4x16x1xf32> to vector<4x16x16xf32>
    %66 = arith.divf %56, %65 : vector<4x16x16xf32>
    %cst_46 = arith.constant 3.000000e-01 : f32
    %67 = vector.broadcast %cst_46 : f32 to vector<4x16x16xf32>
    %68 = arith.mulf %67, %66 : vector<4x16x16xf32>
    %69 = arith.addf %64, %68 : vector<4x16x16xf32>
    %c0_47 = arith.constant 0 : index
    %c0_48 = arith.constant 0 : index
    %c0_49 = arith.constant 0 : index
    %70 = vector.load %arg19[%c0_47, %c0_48, %c0_49] : memref<4x16x16xf32, #tpu.memory_space<vmem>>, vector<4x16x16xf32>
    tpu.vector_store %arg19[%c0_47, %c0_48, %c0_49], %69 {strides = array<i32>} : memref<4x16x16xf32, #tpu.memory_space<vmem>>, vector<4x16x16xf32>,
    %71 = arith.truncf %69 : vector<4x16x16xf32> to vector<4x16x16xbf16>
    %72 = vector.shape_cast %24 : vector<4x16x32xf32> to vector<64x32xf32>
    %73 = arith.truncf %72 : vector<64x32xf32> to vector<64x32xbf16>
    %c0_50 = arith.constant 0 : index
    %c0_51 = arith.constant 0 : index
    %74 = vector.load %arg13[%c0_50, %c0_51] : memref<32x32xf32, #tpu.memory_space<vmem>>, vector<32x32xf32>
    %75 = arith.truncf %74 : vector<32x32xf32> to vector<32x32xbf16>
    %cst_52 = arith.constant dense<0.000000e+00> : vector<64x32xf32>
    %76 = tpu.matmul %73, %75, %cst_52 {dimension_numbers = #tpu.dot_dimension_numbers<[1], [0], [0], [1], [0, 0, 1, 1], [], []>} : vector<64x32xbf16>, vector<32x32xbf16>, vector<64x32xf32> -> vector<64x32xf32>
    %77 = vector.shape_cast %76 : vector<64x32xf32> to vector<4x16x32xf32>
    %78 = arith.truncf %77 : vector<4x16x32xf32> to vector<4x16x32xbf16>
    "tpu.trace_start"() <{level = 10 : i32, message = "bst,bth->bsh"}> : () -> ()
    %cst_53 = arith.constant dense<0.000000e+00> : vector<4x16x32xf32>
    %79 = tpu.matmul %71, %78, %cst_53 {dimension_numbers = #tpu.dot_dimension_numbers<[2], [1], [1], [2], [0, 0, 0, 1, 1, 2], [0], [0]>} : vector<4x16x16xbf16>, vector<4x16x32xbf16>, vector<4x16x32xf32> -> vector<4x16x32xf32>
    "tpu.trace_stop"() : () -> ()
    %cst_54 = arith.constant 0.000000e+00 : f32
    %80 = vector.broadcast %cst_54 : f32 to vector<4x16x32xf32>
    %81 = arith.maximumf %79, %80 : vector<4x16x32xf32>
    %82 = vector.shape_cast %81 : vector<4x16x32xf32> to vector<64x32xf32>
    %83 = arith.truncf %82 : vector<64x32xf32> to vector<64x32xbf16>
    %c0_55 = arith.constant 0 : index
    %c0_56 = arith.constant 0 : index
    %84 = vector.load %arg14[%c0_55, %c0_56] : memref<32x32xf32, #tpu.memory_space<vmem>>, vector<32x32xf32>
    %85 = arith.truncf %84 : vector<32x32xf32> to vector<32x32xbf16>
    %cst_57 = arith.constant dense<0.000000e+00> : vector<64x32xf32>
    %86 = tpu.matmul %83, %85, %cst_57 {dimension_numbers = #tpu.dot_dimension_numbers<[1], [0], [0], [1], [0, 0, 1, 1], [], []>} : vector<64x32xbf16>, vector<32x32xbf16>, vector<64x32xf32> -> vector<64x32xf32>
    %87 = vector.shape_cast %86 : vector<64x32xf32> to vector<4x16x32xf32>
    %88 = arith.truncf %87 : vector<4x16x32xf32> to vector<4x16x32xbf16>
    "tpu.trace_start"() <{level = 10 : i32, message = "bst,bto->bso"}> : () -> ()
    %cst_58 = arith.constant dense<0.000000e+00> : vector<4x16x32xf32>
    %89 = tpu.matmul %71, %88, %cst_58 {dimension_numbers = #tpu.dot_dimension_numbers<[2], [1], [1], [2], [0, 0, 0, 1, 1, 2], [0], [0]>} : vector<4x16x16xbf16>, vector<4x16x32xbf16>, vector<4x16x32xf32> -> vector<4x16x32xf32>
    "tpu.trace_stop"() : () -> ()
    %c0_59 = arith.constant 0 : index
    %c0_60 = arith.constant 0 : index
    %c0_61 = arith.constant 0 : index
    %90 = vector.load %arg20[%c0_59, %c0_60, %c0_61] : memref<4x16x32xf32, #tpu.memory_space<vmem>>, vector<4x16x32xf32>
    tpu.vector_store %arg20[%c0_59, %c0_60, %c0_61], %89 {strides = array<i32>} : memref<4x16x32xf32, #tpu.memory_space<vmem>>, vector<4x16x32xf32>,
    %cst_62 = arith.constant dense<0xFF800000> : vector<4x32xf32>
    %91 = vector.multi_reduction <maximumf>, %89, %cst_62 [1] : vector<4x16x32xf32> to vector<4x32xf32>
    %92 = arith.truncf %91 : vector<4x32xf32> to vector<4x32xbf16>
    %c0_63 = arith.constant 0 : index
    %c0_64 = arith.constant 0 : index
    %93 = vector.load %arg15[%c0_63, %c0_64] : memref<32x32xf32, #tpu.memory_space<vmem>>, vector<32x32xf32>
    %94 = arith.truncf %93 : vector<32x32xf32> to vector<32x32xbf16>
    %cst_65 = arith.constant dense<0.000000e+00> : vector<4x32xf32>
    %95 = tpu.matmul %92, %94, %cst_65 {dimension_numbers = #tpu.dot_dimension_numbers<[1], [0], [0], [1], [0, 0, 1, 1], [], []>} : vector<4x32xbf16>, vector<32x32xbf16>, vector<4x32xf32> -> vector<4x32xf32>
    %c0_66 = arith.constant 0 : index
    %c0_67 = arith.constant 0 : index
    %96 = vector.load %arg16[%c0_66, %c0_67] : memref<1x32xf32, #tpu.memory_space<vmem>>, vector<1x32xf32>
    %97 = vector.broadcast %96 : vector<1x32xf32> to vector<4x32xf32>
    %98 = arith.addf %95, %97 : vector<4x32xf32>
    %cst_68 = arith.constant 0.000000e+00 : f32
    %99 = vector.broadcast %cst_68 : f32 to vector<4x32xf32>
    %100 = arith.maximumf %98, %99 : vector<4x32xf32>
    %c0_69 = arith.constant 0 : index
    %c0_70 = arith.constant 0 : index
    %101 = vector.load %arg21[%c0_69, %c0_70] : memref<4x32xf32, #tpu.memory_space<vmem>>, vector<4x32xf32>
    tpu.vector_store %arg21[%c0_69, %c0_70], %100 {strides = array<i32>} : memref<4x32xf32, #tpu.memory_space<vmem>>, vector<4x32xf32>,
    return
  }
  func.func @transform_0(%arg0: i32) -> (i32, i32) {
    %c0_i32 = arith.constant 0 : i32
    %c0_i32_0 = arith.constant 0 : i32
    %c0_i32_1 = arith.constant 0 : i32
    return %c0_i32, %c0_i32_0 : i32, i32
  }
  func.func @transform_1(%arg0: i32) -> (i32, i32) {
    %c0_i32 = arith.constant 0 : i32
    %c0_i32_0 = arith.constant 0 : i32
    %c0_i32_1 = arith.constant 0 : i32
    return %c0_i32, %c0_i32_0 : i32, i32
  }
  func.func @transform_2(%arg0: i32) -> (i32, i32) {
    %c0_i32 = arith.constant 0 : i32
    %c0_i32_0 = arith.constant 0 : i32
    %c0_i32_1 = arith.constant 0 : i32
    return %c0_i32, %c0_i32_0 : i32, i32
  }
  func.func @transform_3(%arg0: i32) -> (i32, i32, i32) {
    %c0_i32 = arith.constant 0 : i32
    %c0_i32_0 = arith.constant 0 : i32
    %c0_i32_1 = arith.constant 0 : i32
    %c0_i32_2 = arith.constant 0 : i32
    return %c0_i32, %c0_i32_0, %c0_i32_1 : i32, i32, i32
  }
  func.func @transform_4(%arg0: i32) -> (i32, i32) {
    %c0_i32 = arith.constant 0 : i32
    %c0_i32_0 = arith.constant 0 : i32
    %c0_i32_1 = arith.constant 0 : i32
    return %c0_i32, %c0_i32_0 : i32, i32
  }
  func.func @transform_5(%arg0: i32) -> (i32, i32, i32) {
    %c0_i32 = arith.constant 0 : i32
    %c0_i32_0 = arith.constant 0 : i32
    %c0_i32_1 = arith.constant 0 : i32
    %c0_i32_2 = arith.constant 0 : i32
    return %c0_i32, %c0_i32_0, %c0_i32_1 : i32, i32, i32
  }
  func.func @transform_6(%arg0: i32) -> (i32, i32, i32) {
    %c0_i32 = arith.constant 0 : i32
    %c0_i32_0 = arith.constant 0 : i32
    %c0_i32_1 = arith.constant 0 : i32
    %c0_i32_2 = arith.constant 0 : i32
    return %c0_i32, %c0_i32_0, %c0_i32_1 : i32, i32, i32
  }
  func.func @transform_7(%arg0: i32) -> (i32, i32, i32) {
    %c0_i32 = arith.constant 0 : i32
    %c0_i32_0 = arith.constant 0 : i32
    %c0_i32_1 = arith.constant 0 : i32
    %c0_i32_2 = arith.constant 0 : i32
    return %c0_i32, %c0_i32_0, %c0_i32_1 : i32, i32, i32
  }
  func.func @transform_8(%arg0: i32) -> (i32, i32) {
    %c0_i32 = arith.constant 0 : i32
    %c0_i32_0 = arith.constant 0 : i32
    %c0_i32_1 = arith.constant 0 : i32
    return %c0_i32, %c0_i32_0 : i32, i32
  }
  func.func @transform_9(%arg0: i32) -> (i32, i32) {
    %c0_i32 = arith.constant 0 : i32
    %c0_i32_0 = arith.constant 0 : i32
    %c0_i32_1 = arith.constant 0 : i32
    return %c0_i32, %c0_i32_0 : i32, i32
  }
  func.func @transform_10(%arg0: i32) -> (i32, i32) {
    %c0_i32 = arith.constant 0 : i32
    %c0_i32_0 = arith.constant 0 : i32
    %c0_i32_1 = arith.constant 0 : i32
    return %c0_i32, %c0_i32_0 : i32, i32
  }
  func.func @transform_11(%arg0: i32) -> (i32, i32) {
    %c0_i32 = arith.constant 0 : i32
    %c0_i32_0 = arith.constant 0 : i32
    %c0_i32_1 = arith.constant 0 : i32
    return %c0_i32, %c0_i32_0 : i32, i32
  }
  func.func @transform_12(%arg0: i32) -> (i32, i32) {
    %c0_i32 = arith.constant 0 : i32
    %c0_i32_0 = arith.constant 0 : i32
    %c0_i32_1 = arith.constant 0 : i32
    return %c0_i32, %c0_i32_0 : i32, i32
  }
  func.func @transform_13(%arg0: i32) -> (i32, i32) {
    %c0_i32 = arith.constant 0 : i32
    %c0_i32_0 = arith.constant 0 : i32
    %c0_i32_1 = arith.constant 0 : i32
    return %c0_i32, %c0_i32_0 : i32, i32
  }
  func.func @transform_14(%arg0: i32) -> (i32, i32) {
    %c0_i32 = arith.constant 0 : i32
    %c0_i32_0 = arith.constant 0 : i32
    %c0_i32_1 = arith.constant 0 : i32
    return %c0_i32, %c0_i32_0 : i32, i32
  }
  func.func @transform_15(%arg0: i32) -> (i32, i32) {
    %c0_i32 = arith.constant 0 : i32
    %c0_i32_0 = arith.constant 0 : i32
    %c0_i32_1 = arith.constant 0 : i32
    return %c0_i32, %c0_i32_0 : i32, i32
  }
  func.func @transform_16(%arg0: i32) -> (i32, i32, i32) {
    %c0_i32 = arith.constant 0 : i32
    %c0_i32_0 = arith.constant 0 : i32
    %c0_i32_1 = arith.constant 0 : i32
    %c0_i32_2 = arith.constant 0 : i32
    return %c0_i32, %c0_i32_0, %c0_i32_1 : i32, i32, i32
  }
  func.func @transform_17(%arg0: i32) -> (i32, i32, i32) {
    %c0_i32 = arith.constant 0 : i32
    %c0_i32_0 = arith.constant 0 : i32
    %c0_i32_1 = arith.constant 0 : i32
    %c0_i32_2 = arith.constant 0 : i32
    return %c0_i32, %c0_i32_0, %c0_i32_1 : i32, i32, i32
  }
  func.func @transform_18(%arg0: i32) -> (i32, i32, i32) {
    %c0_i32 = arith.constant 0 : i32
    %c0_i32_0 = arith.constant 0 : i32
    %c0_i32_1 = arith.constant 0 : i32
    %c0_i32_2 = arith.constant 0 : i32
    return %c0_i32, %c0_i32_0, %c0_i32_1 : i32, i32, i32
  }
  func.func @transform_19(%arg0: i32) -> (i32, i32, i32) {
    %c0_i32 = arith.constant 0 : i32
    %c0_i32_0 = arith.constant 0 : i32
    %c0_i32_1 = arith.constant 0 : i32
    %c0_i32_2 = arith.constant 0 : i32
    return %c0_i32, %c0_i32_0, %c0_i32_1 : i32, i32, i32
  }
  func.func @transform_20(%arg0: i32) -> (i32, i32) {
    %c0_i32 = arith.constant 0 : i32
    %c0_i32_0 = arith.constant 0 : i32
    %c0_i32_1 = arith.constant 0 : i32
    return %c0_i32, %c0_i32_0 : i32, i32
  }
}

</mosaic_0001>

<bundles_post_ra>
// kernel: tpu_custom_call.1
= control target key start
LH: loop header
LB: loop body
LE: loop exit
PB: predicated region body
PF: predicated region fallthrough
CT: control target
= control target key end

     0   :  { %s4999_s0 = inlined_call_operand.vmem [shape: f32[64,32], index: 0, kind: input, shape index: {}]   ;;  %s5000_s1 = inlined_call_operand.hbm [shape: f32[4,32], index: 1, kind: input, shape index: {}]   ;;  %s5001_s2 = inlined_call_operand.hbm [shape: f32[4,32], index: 2, kind: input, shape index: {}]   ;;  %s5002_s3 = inlined_call_operand.vmem [shape: f32[4,16,32], index: 3, kind: input, shape index: {}]   ;;  %s5003_s4 = inlined_call_operand.hbm [shape: f32[4,32], index: 4, kind: input, shape index: {}]   ;;  %s5004_s5 = inlined_call_operand.vmem [shape: f32[4,16,1], index: 5, kind: input, shape index: {}]   ;;  %s5005_s6 = inlined_call_operand.hbm [shape: f32[4,1,16], index: 6, kind: input, shape index: {}]   ;;  %s5006_s7 = inlined_call_operand.vmem [shape: f32[4,16,16], index: 7, kind: input, shape index: {}]   ;;  %s5007_s8 = inlined_call_operand.vmem [shape: f32[32,32], index: 8, kind: input, shape index: {}]   ;;  %s5008_s9 = inlined_call_operand.vmem [shape: f32[32,32], index: 9, kind: input, shape index: {}]   ;;  %s5009_s10 = inlined_call_operand.hbm [shape: f32[32,32], index: 10, kind: input, shape index: {}]   ;;  %s5010_s11 = inlined_call_operand.vmem [shape: f32[1,32], index: 11, kind: input, shape index: {}]   ;;  %s5011_s12 = inlined_call_operand.hbm [shape: f32[32,32], index: 12, kind: input, shape index: {}]   ;;  %s5012_s13 = inlined_call_operand.hbm [shape: f32[32,32], index: 13, kind: input, shape index: {}]   ;;  %s5013_s14 = inlined_call_operand.hbm [shape: f32[32,32], index: 14, kind: input, shape index: {}]   ;;  %s5014_s15 = inlined_call_operand.vmem [shape: f32[1,32], index: 15, kind: input, shape index: {}]   ;;  %s5015_s16 = inlined_call_operand.hbm [shape: f32[4,16,32], index: 16, kind: output, shape index: {0}]   ;;  %s5016_s17 = inlined_call_operand.hbm [shape: f32[4,16,16], index: 17, kind: output, shape index: {1}]   ;;  %s5017_s18 = inlined_call_operand.hbm [shape: f32[4,16,16], index: 18, kind: output, shape index: {2}]   ;;  %s5018_s19 = inlined_call_operand.hbm [shape: f32[4,16,32], index: 19, kind: output, shape index: {3}]   ;;  %s5019_s20 = inlined_call_operand.hbm [shape: f32[4,32], index: 20, kind: output, shape index: {4}]  }
   0x1   :  { %5026 = sst [smem:[#allocation31_spill]] %s4999_s0 }
   0x2   :  { %5027 = sst [smem:[#allocation32_spill]] %s5000_s1 }
   0x3   :  { %5028 = sst [smem:[#allocation33_spill]] %s5001_s2 }
   0x4   :  { %5029 = sst [smem:[#allocation34_spill]] %s5002_s3 }
   0x5   :  { %5030 = sst [smem:[#allocation35_spill]] %s5003_s4 }
   0x6   :  { %5031 = sst [smem:[#allocation36_spill]] %s5019_s20 }
   0x7   :  { %26 = vsyncpa [#allocation3], 0 }
   0x8   :  { %27 = vsyncpa [#allocation6], 0 }
   0x9   :  { %28 = vsyncpa [#allocation9], 0 }
   0xa   :  { %29 = vsyncpa [#allocation12], 0 }
   0xb   :  { %30 = vsyncpa [#allocation15], 0 }
   0xc   :  { %31 = vsyncpa [#allocation4], 0 }
   0xd   :  { %32 = vsyncpa [#allocation18], 0 }
   0xe   :  { %33 = vsyncpa [#allocation21], 0  ;;  %s3974_s1 = smov [#allocation5]   ;;  %s3975_s23 = smov [#allocation8]  }
   0xf   :  { %s52_s22 = sshll.u32 %s3974_s1, 4  ;;  %s75_s24 = sshll.u32 %s3975_s23, 4  ;;  %s53_s22 = int_to_ptr.vmem [resolvable:$true] %s52_s22  ;;  %s4100_s24 = int_to_ptr.vmem [resolvable:$true] %s75_s24 }
  0x10   :  { %s5032_s3 = sld [smem:[#allocation33_spill]] }
  0x16   :  { %s3672_s26 = scalar_lea.hbm %s5032_s3, 64 }
  0x17   :  { %p3673_p0 = scmp.ne.s32.totalorder %s5032_s3, %s3672_s26  ;;  %p3676_p1 = scmp.lt.u32.totalorder %s3672_s26, %s5032_s3 }
  0x19   :  { %p3678_p2 = pnand %p3676_p1, %p3673_p0 }
  0x1b   :  { %3681 = shalt.err (!%p3678_p2)
}
  0x1c   :  { %s3682_s30 = scalar_lea.vmem %s53_s22, 64  ;;  %p3687_p4 = scmp.lt.s32.totalorder %s53_s22, %s53_s22 }
  0x1d   :  { %p3683_p3 = scmp.ne.s32.totalorder %s53_s22, %s3682_s30  ;;  %p3688_p5 = scmp.lt.s32.totalorder %s3682_s30, %s3682_s30 }
  0x1f   :  { %p3689_p6 = por %p3688_p5, %p3687_p4 }
  0x21   :  { %p3690_p7 = pnand %p3689_p6, %p3683_p3 }
  0x23   :  { %3693 = shalt.err (!%p3690_p7)
}
  0x24   :  { %55 = dma.hbm_to_vmem [thread:$0]  %s5032_s3, 64, %s53_s22, [#allocation6]  }
  0x25   :  { %s3694_s2 = scalar_lea.hbm %s5005_s6, 64 }
  0x26   :  { %p3695_p8 = scmp.ne.s32.totalorder %s5005_s6, %s3694_s2  ;;  %p3698_p9 = scmp.lt.u32.totalorder %s3694_s2, %s5005_s6 }
  0x28   :  { %p3700_p10 = pnand %p3698_p9, %p3695_p8 }
  0x2a   :  { %3703 = shalt.err (!%p3700_p10)
}
  0x2b   :  { %s3704_s4 = scalar_lea.vmem %s4100_s24, 64  ;;  %p3709_p12 = scmp.lt.s32.totalorder %s4100_s24, %s4100_s24 }
  0x2c   :  { %p3705_p11 = scmp.ne.s32.totalorder %s4100_s24, %s3704_s4  ;;  %p3710_p13 = scmp.lt.s32.totalorder %s3704_s4, %s3704_s4 }
  0x2e   :  { %p3711_p0 = por %p3710_p13, %p3709_p12 }
  0x30   :  { %p3712_p1 = pnand %p3711_p0, %p3705_p11 }
  0x32   :  { %3715 = shalt.err (!%p3712_p1)
}
  0x33   :  { %s3976_s22 = smov 16   ;;  %s3977_s3 = smov 1  }
  0x34   :  { %81 = dma.hbm_to_vmem [thread:$0]  %s5005_s6, 64, %s4100_s24, [#allocation9], %s3976_s22, %s3976_s22, %s3977_s3  }
  0x35   :  { %s3978_s0 = smov [#allocation11]   ;;  %s3979_s1 = smov [#allocation2]  }
  0x36   :  { %s107_s21 = sshll.u32 %s3978_s0, 4  ;;  %s42_s23 = sshll.u32 %s3979_s1, 4  ;;  %s108_s21 = int_to_ptr.vmem [resolvable:$true] %s107_s21  ;;  %s43_s23 = int_to_ptr.vmem [resolvable:$true] %s42_s23 }
  0x37   :  { %s3716_s27 = scalar_lea.hbm %s5011_s12, 512 }
  0x38   :  { %p3717_p2 = scmp.ne.s32.totalorder %s5011_s12, %s3716_s27  ;;  %p3720_p3 = scmp.lt.u32.totalorder %s3716_s27, %s5011_s12 }
  0x3a   :  { %p3722_p4 = pnand %p3720_p3, %p3717_p2 }
  0x3c   :  { %3725 = shalt.err (!%p3722_p4)
}
  0x3d   :  { %s3726_s6 = scalar_lea.vmem %s108_s21, 512  ;;  %p3731_p6 = scmp.lt.s32.totalorder %s108_s21, %s108_s21 }
  0x3e   :  { %p3727_p5 = scmp.ne.s32.totalorder %s108_s21, %s3726_s6  ;;  %p3732_p7 = scmp.lt.s32.totalorder %s3726_s6, %s3726_s6 }
  0x40   :  { %p3733_p8 = por %p3732_p7, %p3731_p6 }
  0x42   :  { %p3734_p9 = pnand %p3733_p8, %p3727_p5 }
  0x44   :  { %3737 = shalt.err (!%p3734_p9)
}
  0x45   :  { %s3980_s24 = smov 128   ;;  %s3981_s22 = smov 8  }
  0x46   :  { %113 = dma.hbm_to_vmem [thread:$0]  %s5011_s12, 512, %s108_s21, [#allocation12], %s3980_s24, %s3980_s24, %s3981_s22  }
  0x47   :  { %s5033_s0 = sld [smem:[#allocation32_spill]] }
  0x4d   :  { %s3738_s1 = scalar_lea.hbm %s5033_s0, 64 }
  0x4e   :  { %p3739_p10 = scmp.ne.s32.totalorder %s5033_s0, %s3738_s1  ;;  %p3742_p11 = scmp.lt.u32.totalorder %s3738_s1, %s5033_s0 }
  0x50   :  { %p3744_p12 = pnand %p3742_p11, %p3739_p10 }
  0x52   :  { %3747 = shalt.err (!%p3744_p12)
}
  0x53   :  { %s3748_s28 = scalar_lea.vmem %s43_s23, 64  ;;  %p3753_p0 = scmp.lt.s32.totalorder %s43_s23, %s43_s23 }
  0x54   :  { %p3749_p13 = scmp.ne.s32.totalorder %s43_s23, %s3748_s28  ;;  %p3754_p1 = scmp.lt.s32.totalorder %s3748_s28, %s3748_s28 }
  0x56   :  { %p3755_p2 = por %p3754_p1, %p3753_p0 }
  0x58   :  { %p3756_p3 = pnand %p3755_p2, %p3749_p13 }
  0x5a   :  { %3759 = shalt.err (!%p3756_p3)
}
  0x5b   :  { %45 = dma.hbm_to_vmem [thread:$0]  %s5033_s0, 64, %s43_s23, [#allocation3]  }
  0x5c   :  { %s3982_s4 = smov [#allocation7]   ;;  %s3983_s3 = smov [#allocation10]  }
  0x5d   :  { %s64_s6 = sshll.u32 %s3982_s4, 4  ;;  %s93_s29 = sshll.u32 %s3983_s3, 4  ;;  %s65_s6 = int_to_ptr.vmem [resolvable:$true] %s64_s6  ;;  %s4158_s29 = int_to_ptr.vmem [resolvable:$true] %s93_s29 }
  0x5e   :  { %s5034_s1 = sld [smem:[#allocation35_spill]] }
  0x64   :  { %s3760_s2 = scalar_lea.hbm %s5034_s1, 64 }
  0x65   :  { %p3761_p4 = scmp.ne.s32.totalorder %s5034_s1, %s3760_s2  ;;  %p3764_p5 = scmp.lt.u32.totalorder %s3760_s2, %s5034_s1 }
  0x67   :  { %p3766_p6 = pnand %p3764_p5, %p3761_p4 }
  0x69   :  { %3769 = shalt.err (!%p3766_p6)
}
  0x6a   :  { %s3770_s23 = scalar_lea.vmem %s65_s6, 64  ;;  %p3775_p8 = scmp.lt.s32.totalorder %s65_s6, %s65_s6 }
  0x6b   :  { %p3771_p7 = scmp.ne.s32.totalorder %s65_s6, %s3770_s23  ;;  %p3776_p9 = scmp.lt.s32.totalorder %s3770_s23, %s3770_s23 }
  0x6d   :  { %p3777_p10 = por %p3776_p9, %p3775_p8 }
  0x6f   :  { %p3778_p11 = pnand %p3777_p10, %p3771_p7 }
  0x71   :  { %3781 = shalt.err (!%p3778_p11)
}
  0x72   :  { %67 = dma.hbm_to_vmem [thread:$0]  %s5034_s1, 64, %s65_s6, [#allocation6]  }
  0x73   :  { %s3782_s3 = scalar_lea.hbm %s5009_s10, 512 }
  0x74   :  { %p3783_p12 = scmp.ne.s32.totalorder %s5009_s10, %s3782_s3  ;;  %p3786_p13 = scmp.lt.u32.totalorder %s3782_s3, %s5009_s10 }
  0x76   :  { %p3788_p0 = pnand %p3786_p13, %p3783_p12 }
  0x78   :  { %3791 = shalt.err (!%p3788_p0)
}
  0x79   :  { %s3792_s27 = scalar_lea.vmem %s4158_s29, 512  ;;  %p3797_p2 = scmp.lt.s32.totalorder %s4158_s29, %s4158_s29 }
  0x7a   :  { %p3793_p1 = scmp.ne.s32.totalorder %s4158_s29, %s3792_s27  ;;  %p3798_p3 = scmp.lt.s32.totalorder %s3792_s27, %s3792_s27 }
  0x7c   :  { %p3799_p4 = por %p3798_p3, %p3797_p2 }
  0x7e   :  { %p3800_p5 = pnand %p3799_p4, %p3793_p1 }
  0x80   :  { %3803 = shalt.err (!%p3800_p5)
}
  0x81   :  { %99 = dma.hbm_to_vmem [thread:$0]  %s5009_s10, 512, %s4158_s29, [#allocation9], %s3980_s24, %s3980_s24, %s3981_s22  }
  0x82   :  { %s3984_s26 = smov [#allocation13]   ;;  %s3985_s23 = smov [#allocation14]  }
  0x83   :  { %s119_s28 = sshll.u32 %s3984_s26, 4  ;;  %s131_s0 = sshll.u32 %s3985_s23, 4  ;;  %s120_s28 = int_to_ptr.vmem [resolvable:$true] %s119_s28  ;;  %s4192_s0 = int_to_ptr.vmem [resolvable:$true] %s131_s0 }
  0x84   :  { %s3804_s4 = scalar_lea.hbm %s5012_s13, 512 }
  0x85   :  { %p3805_p6 = scmp.ne.s32.totalorder %s5012_s13, %s3804_s4  ;;  %p3808_p7 = scmp.lt.u32.totalorder %s3804_s4, %s5012_s13 }
  0x87   :  { %p3810_p8 = pnand %p3808_p7, %p3805_p6 }
  0x89   :  { %3813 = shalt.err (!%p3810_p8)
}
  0x8a   :  { %s3814_s10 = scalar_lea.vmem %s120_s28, 512  ;;  %p3819_p10 = scmp.lt.s32.totalorder %s120_s28, %s120_s28 }
  0x8b   :  { %p3815_p9 = scmp.ne.s32.totalorder %s120_s28, %s3814_s10  ;;  %p3820_p11 = scmp.lt.s32.totalorder %s3814_s10, %s3814_s10 }
  0x8d   :  { %p3821_p12 = por %p3820_p11, %p3819_p10 }
  0x8f   :  { %p3822_p13 = pnand %p3821_p12, %p3815_p9 }
  0x91   :  { %3825 = shalt.err (!%p3822_p13)
}
  0x92   :  { %125 = dma.hbm_to_vmem [thread:$0]  %s5012_s13, 512, %s120_s28, [#allocation12], %s3980_s24, %s3980_s24, %s3981_s22  }
  0x93   :  { %s3826_s1 = scalar_lea.hbm %s5013_s14, 512 }
  0x94   :  { %p3827_p0 = scmp.ne.s32.totalorder %s5013_s14, %s3826_s1  ;;  %p3830_p1 = scmp.lt.u32.totalorder %s3826_s1, %s5013_s14 }
  0x96   :  { %p3832_p2 = pnand %p3830_p1, %p3827_p0 }
  0x98   :  { %3835 = shalt.err (!%p3832_p2)
}
  0x99   :  { %s3836_s4 = scalar_lea.vmem %s4192_s0, 512  ;;  %p3841_p4 = scmp.lt.s32.totalorder %s4192_s0, %s4192_s0 }
  0x9a   :  { %p3837_p3 = scmp.ne.s32.totalorder %s4192_s0, %s3836_s4  ;;  %p3842_p5 = scmp.lt.s32.totalorder %s3836_s4, %s3836_s4 }
  0x9c   :  { %p3843_p6 = por %p3842_p5, %p3841_p4 }
  0x9e   :  { %p3844_p7 = pnand %p3843_p6, %p3837_p3 }
  0xa0   :  { %3847 = shalt.err (!%p3844_p7)
}
  0xa1   :  { %137 = dma.hbm_to_vmem [thread:$0]  %s5013_s14, 512, %s4192_s0, [#allocation15], %s3980_s24, %s3980_s24, %s3981_s22  }
  0xa2   :  { %3958 = dma.done.wait [#allocation3], 64  }
  0xa3   :  { %3959 = vsyncadd [#allocation3], 4294967232 }
  0xa4   :  { %3960 = dma.done.wait [#allocation6], 128  }
  0xa5   :  { %3961 = vsyncadd [#allocation6], 4294967168 }
  0xa6   :  { %3962 = dma.done.wait [#allocation9], 576  }
  0xa7   :  { %3963 = vsyncadd [#allocation9], 4294966720 }
  0xa8   :  { %3964 = dma.done.wait [#allocation12], 1024  }
  0xa9   :  { %3965 = vsyncadd [#allocation12], 4294966272 }
  0xaa   :  { %3966 = dma.done.wait [#allocation15], 512  }
  0xab   :  { %3967 = vsyncadd [#allocation15], 4294966784  ;;  %v375_v0 = vlaneseq  ;;  %v3986_v1 = vmov 1966171168   ;;  %v3987_v3 = vmov 0.0   ;;  %vm3988_vm0 = vmmov 0  }
  0xac   :  { %v373_v2 = vunpack.c.l.s4 %v3986_v1  ;;  %3265 = vmatprep.subr.bf16.mxu1 %v3987_v3  ;;  %3269 = vmatprep.mubr.msk.bf16.mxu1 %vm3988_vm0, %v3987_v3  ;;  %v3059_v8 = vld.sshfl [vmem:[#allocation7] sm:$0x33 pattern:$0x75316420]  ;;  %s5035_s3 = sld [smem:[#allocation34_spill]]  ;;  %v271_v16 = vld [vmem:[#allocation10] sm:$0xff] }
  0xad   :  { %v376_v4 = vshrl.u32 %v375_v0, 7  ;;  %v457_v10 = vcombine.high %v3059_v8, %v3059_v8  ;;  %v272_v17 = vld [vmem:[#allocation10 + $0x8] sm:$0xff]  ;;  %vm183_vm1 = vcmask 261120   ;;  %v273_v58 = vld [vmem:[#allocation10 + $0x10] sm:$0xff]  ;;  %v274_v59 = vld [vmem:[#allocation10 + $0x18] sm:$0xff]  ;;  %s5036_s20 = sld [smem:[#allocation31_spill]] }
  0xae   :  { %v374_v5 = vunpack.c.0.s8 %v373_v2  ;;  %v275_v18 = vpack.c.bf16 %v272_v17, %v271_v16  ;;  %v269_v63 = vld [vmem:[#allocation5] sm:$0xf]  ;;  %v264_v1 = vld [vmem:[%s5008_s9 + $0x8] sm:$0xff]  ;;  %vm4568_vm2 = vmpackc.low %vm183_vm1, %vm183_vm1  ;;  %vm2046_vm3 = vcmask 130048   ;;  %vm2918_vm12 = vcmask 1041409   ;;  %s3991_s30 = smov [#allocation20]  }
  0xaf   :  { %v4234_v7 = vsub.s32 0, %v376_v4  ;;  %v263_v0 = vld [vmem:[%s5008_s9] sm:$0xff]  ;;  %vm2920_vm13 = vcmask 1042434   ;;  %vm2922_vm14 = vcmask 1043459   ;;  %s3012_s2 = sshll.u32 %s3991_s30, 4  ;;  %s4910_s2 = int_to_ptr.vmem [resolvable:$true] %s3012_s2 }
  0xb0   :  { %v4232_v6 = vsub.s32 %v374_v5, %v376_v4  ;;  %3266 = vmatpush3.bf16.msra.mxu1 %v275_v18 }
  0xb1   :  { %3267 = vmatprep.subr.bf16.mxu1 %v3987_v3 }
  0xb2   :  { %v464_v9 = vrot.slane %v3059_v8, %v4232_v6  ;;  %v440_v11 = vld [vmem:[%s5035_s3] sm:$0xff]  ;;  %v441_v12 = vld [vmem:[%s5035_s3 + $0x8] sm:$0xff]  ;;  %v471_v14 = vrot.slane %v457_v10, %v4232_v6  ;;  %v442_v38 = vld [vmem:[%s5035_s3 + $0x10] sm:$0xff] }
  0xb3   :  { %v443_v42 = vld [vmem:[%s5035_s3 + $0x18] sm:$0xff]  ;;  %v4354_v8 = vld [vmem:[%s5035_s3 + $0x20] sm:$0xff] }
  0xb4   :  { %v4244_v13 = vrot.slane %v464_v9, %v4234_v7  ;;  %v472_v15 = vcombine.high %v464_v9, %v464_v9  ;;  %v4251_v20 = vrot.slane %v471_v14, %v4234_v7  ;;  %v473_v23 = vcombine.high %v471_v14, %v471_v14  ;;  %v177_v10 = vld [vmem:[%s5007_s8] sm:$0xff] }
  0xb5   :  { %v276_v9 = vpack.c.bf16 %v274_v59, %v273_v58  ;;  %v165_v14 = vld [vmem:[%s5036_s20] sm:$0xff]  ;;  %v167_v59 = vld [vmem:[%s5036_s20 + $0x10] sm:$0xff] }
  0xb6   :  { %v4248_v19 = vmul.f32 %v4244_v13, %v440_v11  ;;  %v4254_v21 = vmul.f32 %v4244_v13, %v441_v12  ;;  %v4257_v22 = vrot.slane %v472_v15, %v4234_v7  ;;  %v4262_v25 = vmul.f32 %v4251_v20, %v440_v11  ;;  %v166_v15 = vld [vmem:[%s5036_s20 + $0x8] sm:$0xff] }
  0xb7   :  { %v4267_v27 = vmul.f32 %v4251_v20, %v441_v12  ;;  %v4274_v29 = vrot.slane %v473_v23, %v4234_v7  ;;  %v4307_v45 = vmul.f32 %v4244_v13, %v442_v38  ;;  %v4313_v48 = vmul.f32 %v4244_v13, %v443_v42  ;;  %v4377_v23 = vld [vmem:[%s5035_s3 + $0x28] sm:$0xff]  ;;  %3268 = vmatpush3.bf16.msra.mxu1 %v276_v9 }
  0xb8   :  { %v526_v24 = vmul.f32 %v4248_v19, %v4248_v19  ;;  %v527_v26 = vmul.f32 %v4254_v21, %v4254_v21  ;;  %v4271_v28 = vmul.f32 %v4257_v22, %v440_v11  ;;  %v528_v31 = vmul.f32 %v4262_v25, %v4262_v25  ;;  %3273 = vmatprep.subr.bf16.mxu1 %v3987_v3 }
  0xb9   :  { %v529_v32 = vmul.f32 %v4267_v27, %v4267_v27  ;;  %v4282_v33 = vmul.f32 %v4257_v22, %v441_v12  ;;  %v4289_v37 = vmul.f32 %v4274_v29, %v440_v11  ;;  %v4298_v41 = vmul.f32 %v4274_v29, %v441_v12  ;;  %v178_v12 = vld [vmem:[%s5007_s8 + $0x8] sm:$0xff] }
  0xba   :  { %v558_v30 = vsel %vm183_vm1, %v526_v24, 0.0  ;;  %v564_v34 = vsel %vm183_vm1, %v528_v31, 0.0  ;;  %v561_v35 = vsel %vm183_vm1, %v527_v26, 0.0  ;;  %v530_v36 = vmul.f32 %v4271_v28, %v4271_v28  ;;  %v265_v26 = vld [vmem:[%s5008_s9 + $0x10] sm:$0xff]  ;;  %v266_v31 = vld [vmem:[%s5008_s9 + $0x18] sm:$0xff] }
  0xbb   :  { %559 = vadd.xlane.f32.xlu0 %v558_v30  ;;  %565 = vadd.xlane.f32.xlu1 %v564_v34  ;;  %v567_v39 = vsel %vm183_vm1, %v529_v32, 0.0  ;;  %v531_v40 = vmul.f32 %v4282_v33, %v4282_v33  ;;  %v532_v44 = vmul.f32 %v4289_v37, %v4289_v37  ;;  %v533_v47 = vmul.f32 %v4298_v41, %v4298_v41  ;;  %v179_v32 = vld [vmem:[%s5007_s8 + $0x10] sm:$0xff]  ;;  %v180_v34 = vld [vmem:[%s5007_s8 + $0x18] sm:$0xff] }
  0xbc   :  { %v570_v43 = vsel %vm183_vm1, %v530_v36, 0.0  ;;  %v534_v50 = vmul.f32 %v4307_v45, %v4307_v45  ;;  %v4319_v51 = vmul.f32 %v4251_v20, %v442_v38  ;;  %v535_v53 = vmul.f32 %v4313_v48, %v4313_v48 }
  0xbd   :  { %v573_v46 = vsel %vm183_vm1, %v531_v40, 0.0  ;;  %v576_v49 = vsel %vm183_vm1, %v532_v44, 0.0  ;;  %v579_v52 = vsel %vm183_vm1, %v533_v47, 0.0  ;;  %v4325_v54 = vmul.f32 %v4251_v20, %v443_v42 }
  0xbe   :  { %v582_v55 = vsel %vm183_vm1, %v534_v50, 0.0  ;;  %v536_v56 = vmul.f32 %v4319_v51, %v4319_v51  ;;  %v4331_v57 = vmul.f32 %v4257_v22, %v442_v38  ;;  %v585_v60 = vsel %vm183_vm1, %v535_v53, 0.0 }
  0xbf   :  { %562 = vadd.xlane.f32.xlu0 %v561_v35  ;;  %568 = vadd.xlane.f32.xlu1 %v567_v39  ;;  %v537_v61 = vmul.f32 %v4325_v54, %v4325_v54  ;;  %v4337_v62 = vmul.f32 %v4257_v22, %v443_v42  ;;  %v4349_v5 = vmul.f32 %v4274_v29, %v442_v38 }
  0xc0   :  { %v588_v2 = vsel %vm183_vm1, %v536_v56, 0.0  ;;  %v538_v4 = vmul.f32 %v4331_v57, %v4331_v57  ;;  %v270_v11 = vpack.c.bf16 %v269_v63, %v269_v63  ;;  %v4372_v18 = vmul.f32 %v4274_v29, %v443_v42  ;;  %v170_v63 = vld [vmem:[%s5036_s20 + $0x28] sm:$0xff] }
  0xc1   :  { %v591_v16 = vsel %vm183_vm1, %v537_v61, 0.0  ;;  %v539_v17 = vmul.f32 %v4337_v62, %v4337_v62  ;;  %v267_v24 = vpack.c.bf16 %v264_v1, %v263_v0  ;;  %v4384_v30 = vmul.f32 %v4244_v13, %v4354_v8  ;;  %v169_v61 = vld [vmem:[%s5036_s20 + $0x20] sm:$0xff] }
  0xc2   :  { %v594_v35 = vsel %vm183_vm1, %v538_v4, 0.0  ;;  %v540_v36 = vmul.f32 %v4349_v5, %v4349_v5  ;;  %v181_v38 = vpack.c.bf16 %v178_v12, %v177_v10  ;;  %v173_v39 = vpack.c.bf16 %v166_v15, %v165_v14  ;;  %3270 = vmatmul.mubr.msk.bf16.vlgmr.msra.gmra.mrb[0].mxu1 %vm183_vm1, %v270_v11 }
  0xc3   :  { %571 = vadd.xlane.f32.xlu0 %v570_v43  ;;  %574 = vadd.xlane.f32.xlu1 %v573_v46  ;;  %v4401_v40 = vmul.f32 %v4244_v13, %v4377_v23  ;;  %v597_v42 = vsel %vm183_vm1, %v539_v17, 0.0  ;;  %v541_v43 = vmul.f32 %v4372_v18, %v4372_v18  ;;  %v268_v44 = vpack.c.bf16 %v266_v31, %v265_v26  ;;  %v261_v46 = vld [vmem:[#allocation2] sm:$0xf]  ;;  %v446_v17 = vld [vmem:[%s5035_s3 + $0x30] sm:$0xff] }
  0xc4   :  { %3274 = vmatpush3.bf16.msra.mxu1 %v267_v24  ;;  %3277 = vmatprep.mubr.msk.bf16.mxu1 %vm3988_vm0, %v3987_v3  ;;  %v182_v47 = vpack.c.bf16 %v180_v34, %v179_v32  ;;  %v542_v50 = vmul.f32 %v4384_v30, %v4384_v30  ;;  %v262_v53 = vpack.c.bf16 %v261_v46, %v261_v46  ;;  %v172_v32 = vld [vmem:[%s5036_s20 + $0x38] sm:$0xff] }
  0xc5   :  { %3275 = vmatprep.subr.bf16.mxu1 %v3987_v3  ;;  %3253 = vmatprep.subr.bf16.mxu0 %v181_v38  ;;  %v543_v56 = vmul.f32 %v4401_v40, %v4401_v40  ;;  %v4423_v58 = vmul.f32 %v4251_v20, %v4377_v23  ;;  %v4450_v11 = vmul.f32 %v4257_v22, %v4377_v23  ;;  %v447_v34 = vld [vmem:[%s5035_s3 + $0x38] sm:$0xff] }
  0xc6   :  { %3257 = vmatprep.mubr.msk.bf16.mxu0 %vm183_vm1, %v173_v39  ;;  %3254 = vmatpush3.bf16.msra.mxu0 %v181_v38  ;;  %v606_v0 = vsel %vm183_vm1, %v542_v50, 0.0  ;;  %v175_v12 = vpack.c.bf16 %v170_v63, %v169_v61  ;;  %v4468_v31 = vmul.f32 %v4274_v29, %v4377_v23  ;;  %v4515_v61 = vmul.f32 %v4257_v22, %v447_v34 }
  0xc7   :  { %577 = vadd.xlane.f32.xlu0 %v576_v49  ;;  %580 = vadd.xlane.f32.xlu1 %v579_v52  ;;  %v600_v49 = vsel %vm183_vm1, %v540_v36, 0.0  ;;  %v4415_v52 = vmul.f32 %v4251_v20, %v4354_v8  ;;  %v609_v9 = vsel %vm183_vm1, %v543_v56, 0.0  ;;  %v545_v10 = vmul.f32 %v4423_v58, %v4423_v58 }
  0xc8   :  { %3276 = vmatpush3.bf16.msra.mxu1 %v268_v44  ;;  %3255 = vmatprep.subr.bf16.mxu0 %v182_v47  ;;  %v547_v26 = vmul.f32 %v4450_v11, %v4450_v11  ;;  %v4484_v36 = vmul.f32 %v4244_v13, %v446_v17  ;;  %v4509_v56 = vmul.f32 %v4257_v22, %v446_v17 }
  0xc9   :  { %v544_v1 = vmul.f32 %v4415_v52, %v4415_v52  ;;  %v615_v24 = vsel %vm183_vm1, %v545_v10, 0.0 }
  0xca   :  { %3256 = vmatpush3.bf16.msra.mxu0 %v182_v47  ;;  %v621_v39 = vsel %vm183_vm1, %v547_v26, 0.0  ;;  %v550_v46 = vmul.f32 %v4484_v36, %v4484_v36  ;;  %v4496_v47 = vmul.f32 %v4251_v20, %v446_v17  ;;  %v554_v63 = vmul.f32 %v4509_v56, %v4509_v56 }
  0xcb   :  { %583 = vadd.xlane.f32.xlu0 %v582_v55  ;;  %586 = vadd.xlane.f32.xlu1 %v585_v60  ;;  %v603_v55 = vsel %vm183_vm1, %v541_v43, 0.0  ;;  %v168_v60 = vld [vmem:[%s5036_s20 + $0x18] sm:$0xff]  ;;  %v612_v14 = vsel %vm183_vm1, %v544_v1, 0.0  ;;  %v4490_v43 = vmul.f32 %v4244_v13, %v447_v34  ;;  %v4503_v13 = vmul.f32 %v4251_v20, %v447_v34 }
  0xcc   :  { %3278 = vmatmul.mubr.msk.bf16.vlgmr.msra.gmra.mrb[4].mxu1 %vm183_vm1, %v262_v53  ;;  %v174_v4 = vpack.c.bf16 %v168_v60, %v167_v59  ;;  %v630_v53 = vsel %vm183_vm1, %v550_v46, 0.0  ;;  %v3989_v26 = vmov 0  }
  0xcd   :  { %v551_v50 = vmul.f32 %v4490_v43, %v4490_v43  ;;  %v553_v60 = vmul.f32 %v4503_v13, %v4503_v13  ;;  %3591 = vset.pattern.permute.xlu1 %v3989_v26  ;;  %3590 = vset.pattern.permute.xlu0 %v3989_v26 }
  0xce   :  { %3258 = vmatmul.mubr.msk.bf16.vlgmr.msra.gmra.mrb[0].mxu0 %vm183_vm1, %v174_v4  ;;  %v555_v4 = vmul.f32 %v4515_v61, %v4515_v61 }
  0xcf   :  { %589 = vadd.xlane.f32.xlu0 %v588_v2  ;;  %592 = vadd.xlane.f32.xlu1 %v591_v16  ;;  %v4442_v2 = vmul.f32 %v4257_v22, %v4354_v8  ;;  %v4457_v16 = vmul.f32 %v4274_v29, %v4354_v8  ;;  %v171_v8 = vld [vmem:[%s5036_s20 + $0x30] sm:$0xff]  ;;  %v633_v59 = vsel %vm183_vm1, %v551_v50, 0.0  ;;  %v639_v1 = vsel %vm183_vm1, %v553_v60, 0.0 }
  0xd0   :  { %3261 = vmatprep.mubr.msk.bf16.mxu0 %vm183_vm1, %v175_v12  ;;  %v176_v38 = vpack.c.bf16 %v172_v32, %v171_v8  ;;  %v642_v22 = vsel %vm183_vm1, %v554_v63, 0.0  ;;  %v645_v12 = vsel %vm183_vm1, %v555_v4, 0.0  ;;  %v2149_v8 = vld [vmem:[%s5004_s5 + $0x10] sm:$0xff]  ;;  %v2150_v32 = vld [vmem:[%s5004_s5 + $0x18] sm:$0xff] }
  0xd1   :  { %v546_v15 = vmul.f32 %v4442_v2, %v4442_v2  ;;  %v548_v23 = vmul.f32 %v4457_v16, %v4457_v16 }
  0xd3   :  { %595 = vadd.xlane.f32.xlu0 %v594_v35  ;;  %598 = vadd.xlane.f32.xlu1 %v597_v42  ;;  %v618_v35 = vsel %vm183_vm1, %v546_v15, 0.0  ;;  %v549_v42 = vmul.f32 %v4468_v31, %v4468_v31  ;;  %v624_v44 = vsel %vm183_vm1, %v548_v23, 0.0  ;;  %v2153_v23 = vld [vmem:[%s5004_s5 + $0x30] sm:$0xff] }
  0xd6   :  { %3262 = vmatmul.mubr.msk.bf16.gmra.mrb[4].mxu0 %vm183_vm1, %v176_v38  ;;  %v2154_v38 = vld [vmem:[%s5004_s5 + $0x38] sm:$0xff] }
  0xd7   :  { %601 = vadd.xlane.f32.xlu0 %v600_v49  ;;  %604 = vadd.xlane.f32.xlu1 %v603_v55  ;;  %v627_v49 = vsel %vm183_vm1, %v549_v42, 0.0  ;;  %v552_v55 = vmul.f32 %v4496_v47, %v4496_v47 }
  0xd9   :  { %v636_v20 = vsel %vm183_vm1, %v552_v55, 0.0 }
  0xdb   :  { %607 = vadd.xlane.f32.xlu0 %v606_v0  ;;  %610 = vadd.xlane.f32.xlu1 %v609_v9  ;;  %v4521_v0 = vmul.f32 %v4274_v29, %v446_v17  ;;  %v4527_v9 = vmul.f32 %v4274_v29, %v447_v34  ;;  %v2148_v29 = vld [vmem:[%s5004_s5 + $0x8] sm:$0xff]  ;;  %v2151_v34 = vld [vmem:[%s5004_s5 + $0x20] sm:$0xff] }
  0xdd   :  { %v556_v10 = vmul.f32 %v4521_v0, %v4521_v0 }
  0xdf   :  { %613 = vadd.xlane.f32.xlu0 %v612_v14  ;;  %616 = vadd.xlane.f32.xlu1 %v615_v24  ;;  %v557_v14 = vmul.f32 %v4527_v9, %v4527_v9  ;;  %v648_v15 = vsel %vm183_vm1, %v556_v10, 0.0  ;;  %v2147_v24 = vld [vmem:[%s5004_s5] sm:$0xff] }
  0xe1   :  { %v651_v17 = vsel %vm183_vm1, %v557_v14, 0.0 }
  0xe3   :  { %619 = vadd.xlane.f32.xlu0 %v618_v35  ;;  %622 = vadd.xlane.f32.xlu1 %v621_v39  ;;  %v2152_v35 = vld [vmem:[%s5004_s5 + $0x28] sm:$0xff] }
  0xe7   :  { %625 = vadd.xlane.f32.xlu0 %v624_v44  ;;  %628 = vadd.xlane.f32.xlu1 %v627_v49 }
  0xeb   :  { %631 = vadd.xlane.f32.xlu0 %v630_v53  ;;  %634 = vadd.xlane.f32.xlu1 %v633_v59 }
  0xef   :  { %637 = vadd.xlane.f32.xlu0 %v636_v20  ;;  %640 = vadd.xlane.f32.xlu1 %v639_v1 }
  0xf3   :  { %643 = vadd.xlane.f32.xlu0 %v642_v22  ;;  %646 = vadd.xlane.f32.xlu1 %v645_v12 }
  0xf7   :  { %649 = vadd.xlane.f32.xlu0 %v648_v15  ;;  %652 = vadd.xlane.f32.xlu1 %v651_v17 }
 0x108   :  { %2162 = vperm.xlu1 %3591, %v2148_v29  }
 0x10c   :  { %2167 = vperm.xlu1 %3591, %v2149_v8  }
 0x10d   :  { %2157 = vperm.xlu0 %3590, %v2147_v24  }
 0x110   :  { %2172 = vperm.xlu1 %3591, %v2150_v32  }
 0x114   :  { %2177 = vperm.xlu1 %3591, %v2151_v34  }
 0x118   :  { %2182 = vperm.xlu1 %3591, %v2152_v35  }
 0x11c   :  { %2187 = vperm.xlu1 %3591, %v2153_v23  }
 0x120   :  { %2192 = vperm.xlu1 %3591, %v2154_v38  }
 0x148   :  { %v560_v39 = vpop.xlane.xlu0 %559  ;;  %v566_v44 = vpop.xlane.xlu1 %565 }
 0x149   :  { %v654_v42 = vmax.f32 %v560_v39, 1e-24  ;;  %v656_v46 = vmax.f32 %v566_v44, 1e-24 }
 0x14b   :  { %3592 = vrsqrt.f32 %v654_v42 }
 0x14c   :  { %v563_v49 = vpop.xlane.xlu0 %562  ;;  %3594 = vrsqrt.f32 %v656_v46  ;;  %v569_v53 = vpop.xlane.xlu1 %568 }
 0x14d   :  { %v655_v50 = vmax.f32 %v563_v49, 1e-24  ;;  %v657_v55 = vmax.f32 %v569_v53, 1e-24 }
 0x14f   :  { %3596 = vrsqrt.f32 %v655_v50 }
 0x150   :  { %v572_v59 = vpop.xlane.xlu0 %571  ;;  %3598 = vrsqrt.f32 %v657_v55  ;;  %v575_v20 = vpop.xlane.xlu1 %574 }
 0x151   :  { %v658_v60 = vmax.f32 %v572_v59, 1e-24  ;;  %v659_v63 = vmax.f32 %v575_v20, 1e-24 }
 0x153   :  { %3600 = vrsqrt.f32 %v658_v60 }
 0x154   :  { %v578_v1 = vpop.xlane.xlu0 %577  ;;  %3602 = vrsqrt.f32 %v659_v63  ;;  %v581_v10 = vpop.xlane.xlu1 %580 }
 0x155   :  { %v3593_v4 = vpop.eup %3592  ;;  %v660_v22 = vmax.f32 %v578_v1, 1e-24  ;;  %v661_v15 = vmax.f32 %v581_v10, 1e-24 }
 0x156   :  { %v718_v12 = vmul.f32 %v3593_v4, %v4248_v19  ;;  %v3595_v14 = vpop.eup %3594 }
 0x157   :  { %3604 = vrsqrt.f32 %v660_v22  ;;  %v720_v29 = vmul.f32 %v3595_v14, %v4262_v25 }
 0x158   :  { %3285 = vmatprep.mubr.msk.f32.mxu0 %vm183_vm1, %v718_v12  ;;  %v584_v17 = vpop.xlane.xlu0 %583  ;;  %3606 = vrsqrt.f32 %v661_v15  ;;  %v587_v8 = vpop.xlane.xlu1 %586 }
 0x159   :  { %v3597_v24 = vpop.eup %3596  ;;  %v662_v26 = vmax.f32 %v584_v17, 1e-24  ;;  %3292 = vmatprep.mubr.msk.f32.mxu1 %vm183_vm1, %v720_v29  ;;  %v663_v35 = vmax.f32 %v587_v8, 1e-24 }
 0x15a   :  { %v719_v32 = vmul.f32 %v3597_v24, %v4254_v21  ;;  %v3599_v34 = vpop.eup %3598 }
 0x15b   :  { %3608 = vrsqrt.f32 %v662_v26  ;;  %v721_v25 = vmul.f32 %v3599_v34, %v4267_v27 }
 0x15c   :  { %v590_v23 = vpop.xlane.xlu0 %589  ;;  %v3473_v38 = vpack.c.bf16 %v719_v32, %v718_v12  ;;  %3610 = vrsqrt.f32 %v663_v35  ;;  %v593_v44 = vpop.xlane.xlu1 %592 }
 0x15d   :  { %v3601_v39 = vpop.eup %3600  ;;  %v664_v42 = vmax.f32 %v590_v23, 1e-24  ;;  %v3479_v21 = vpack.c.bf16 %v721_v25, %v720_v29  ;;  %v665_v50 = vmax.f32 %v593_v44, 1e-24 }
 0x15e   :  { %3475 = vmatprep.subr.msk.bf16.mxu0 %vm4568_vm2, %v3473_v38  ;;  %v722_v46 = vmul.f32 %v3601_v39, %v4271_v28  ;;  %v3603_v49 = vpop.eup %3602 }
 0x15f   :  { %3612 = vrsqrt.f32 %v664_v42  ;;  %3478 = vmatpush3.bf16.xpose.msk.msra.mxu0 %vm4568_vm2, %v3473_v38  ;;  %3481 = vmatprep.subr.msk.bf16.mxu1 %vm4568_vm2, %v3479_v21  ;;  %v723_v53 = vmul.f32 %v3603_v49, %v4282_v33 }
 0x160   :  { %v596_v27 = vpop.xlane.xlu0 %595  ;;  %3614 = vrsqrt.f32 %v665_v50  ;;  %3484 = vmatpush3.bf16.xpose.msk.msra.mxu1 %vm4568_vm2, %v3479_v21  ;;  %v599_v60 = vpop.xlane.xlu1 %598 }
 0x161   :  { %v3605_v55 = vpop.eup %3604  ;;  %v666_v59 = vmax.f32 %v596_v27, 1e-24  ;;  %v3485_v28 = vpack.c.bf16 %v723_v53, %v722_v46  ;;  %v667_v1 = vmax.f32 %v599_v60, 1e-24 }
 0x162   :  { %v724_v20 = vmul.f32 %v3605_v55, %v4289_v37  ;;  %v3607_v63 = vpop.eup %3606 }
 0x163   :  { %3616 = vrsqrt.f32 %v666_v59  ;;  %3487 = vmatprep.subr.msk.bf16.mxu0 %vm4568_vm2, %v3485_v28  ;;  %v725_v22 = vmul.f32 %v3607_v63, %v4298_v41 }
 0x164   :  { %v602_v4 = vpop.xlane.xlu0 %601  ;;  %3618 = vrsqrt.f32 %v667_v1  ;;  %v605_v12 = vpop.xlane.xlu1 %604 }
 0x165   :  { %v3609_v33 = vpop.eup %3608  ;;  %v668_v10 = vmax.f32 %v602_v4, 1e-24  ;;  %v3491_v14 = vpack.c.bf16 %v725_v22, %v724_v20  ;;  %v669_v37 = vmax.f32 %v605_v12, 1e-24 }
 0x166   :  { %3286 = vmatmul.mubr.msk.f32.vlgmr.msra.gmra.mrb[8].mxu0 %vm183_vm1, %v719_v32  ;;  %v726_v15 = vmul.f32 %v3609_v33, %v4307_v45  ;;  %v3611_v17 = vpop.eup %3610 }
 0x167   :  { %3620 = vrsqrt.f32 %v668_v10  ;;  %3490 = vmatpush3.bf16.xpose.msk.msra.mxu0 %vm4568_vm2, %v3485_v28  ;;  %3299 = vmatprep.mubr.msk.f32.mxu0 %vm183_vm1, %v722_v46  ;;  %v727_v29 = vmul.f32 %v3611_v17, %v4313_v48 }
 0x168   :  { %3293 = vmatmul.mubr.msk.f32.vlgmr.msra.gmra.mrb[8].mxu1 %vm183_vm1, %v721_v25  ;;  %3493 = vmatprep.subr.msk.bf16.mxu1 %vm4568_vm2, %v3491_v14  ;;  %v608_v41 = vpop.xlane.xlu0 %607  ;;  %3622 = vrsqrt.f32 %v669_v37  ;;  %v611_v26 = vpop.xlane.xlu1 %610 }
 0x169   :  { %v3613_v24 = vpop.eup %3612  ;;  %3496 = vmatpush3.bf16.xpose.msk.msra.mxu1 %vm4568_vm2, %v3491_v14  ;;  %3306 = vmatprep.mubr.msk.f32.mxu1 %vm183_vm1, %v724_v20  ;;  %v670_v45 = vmax.f32 %v608_v41, 1e-24  ;;  %v3497_v8 = vpack.c.bf16 %v727_v29, %v726_v15  ;;  %v671_v35 = vmax.f32 %v611_v26, 1e-24 }
 0x16a   :  { %v728_v32 = vmul.f32 %v3613_v24, %v4319_v51  ;;  %v3615_v34 = vpop.eup %3614 }
 0x16b   :  { %3624 = vrsqrt.f32 %v670_v45  ;;  %3499 = vmatprep.subr.msk.bf16.mxu0 %vm4568_vm2, %v3497_v8  ;;  %v729_v48 = vmul.f32 %v3615_v34, %v4325_v54 }
 0x16c   :  { %v614_v23 = vpop.xlane.xlu0 %613  ;;  %3626 = vrsqrt.f32 %v671_v35  ;;  %v617_v39 = vpop.xlane.xlu1 %616 }
 0x16d   :  { %v3617_v38 = vpop.eup %3616  ;;  %v672_v25 = vmax.f32 %v614_v23, 1e-24  ;;  %v3503_v42 = vpack.c.bf16 %v729_v48, %v728_v32  ;;  %v673_v51 = vmax.f32 %v617_v39, 1e-24 }
 0x16e   :  { %3300 = vmatmul.mubr.msk.f32.vlgmr.msra.gmra.mrb[10].mxu0 %vm183_vm1, %v723_v53  ;;  %v730_v44 = vmul.f32 %v3617_v38, %v4331_v57  ;;  %v3619_v21 = vpop.eup %3618 }
 0x16f   :  { %3628 = vrsqrt.f32 %v672_v25  ;;  %3502 = vmatpush3.bf16.xpose.msk.msra.mxu0 %vm4568_vm2, %v3497_v8  ;;  %3313 = vmatprep.mubr.msk.f32.mxu0 %vm183_vm1, %v726_v15  ;;  %v731_v46 = vmul.f32 %v3619_v21, %v4337_v62 }
 0x170   :  { %3307 = vmatmul.mubr.msk.f32.vlgmr.msra.gmra.mrb[10].mxu1 %vm183_vm1, %v725_v22  ;;  %3505 = vmatprep.subr.msk.bf16.mxu1 %vm4568_vm2, %v3503_v42  ;;  %v620_v54 = vpop.xlane.xlu0 %619  ;;  %3630 = vrsqrt.f32 %v673_v51  ;;  %v623_v50 = vpop.xlane.xlu1 %622 }
 0x171   :  { %v3621_v49 = vpop.eup %3620  ;;  %3508 = vmatpush3.bf16.xpose.msk.msra.mxu1 %vm4568_vm2, %v3503_v42  ;;  %3320 = vmatprep.mubr.msk.f32.mxu1 %vm183_vm1, %v728_v32  ;;  %v674_v57 = vmax.f32 %v620_v54, 1e-24  ;;  %v3509_v27 = vpack.c.bf16 %v731_v46, %v730_v44  ;;  %v675_v59 = vmax.f32 %v623_v50, 1e-24 }
 0x172   :  { %v732_v53 = vmul.f32 %v3621_v49, %v4349_v5  ;;  %v3623_v55 = vpop.eup %3622 }
 0x173   :  { %3632 = vrsqrt.f32 %v674_v57  ;;  %3511 = vmatprep.subr.msk.bf16.mxu0 %vm4568_vm2, %v3509_v27  ;;  %v733_v62 = vmul.f32 %v3623_v55, %v4372_v18 }
 0x174   :  { %v626_v60 = vpop.xlane.xlu0 %625  ;;  %3634 = vrsqrt.f32 %v675_v59  ;;  %v629_v63 = vpop.xlane.xlu1 %628 }
 0x175   :  { %v3625_v28 = vpop.eup %3624  ;;  %v676_v20 = vmax.f32 %v626_v60, 1e-24  ;;  %v3515_v1 = vpack.c.bf16 %v733_v62, %v732_v53  ;;  %v677_v5 = vmax.f32 %v629_v63, 1e-24  ;;  %v2324_v63 = vld [vmem:[#allocation11 + $0x8] sm:$0xff] }
 0x176   :  { %3314 = vmatmul.mubr.msk.f32.vlgmr.msra.gmra.mrb[12].mxu0 %vm183_vm1, %v727_v29  ;;  %v734_v4 = vmul.f32 %v3625_v28, %v4384_v30  ;;  %v3627_v22 = vpop.eup %3626 }
 0x177   :  { %3636 = vrsqrt.f32 %v676_v20  ;;  %3514 = vmatpush3.bf16.xpose.msk.msra.mxu0 %vm4568_vm2, %v3509_v27  ;;  %3327 = vmatprep.mubr.msk.f32.mxu0 %vm183_vm1, %v730_v44  ;;  %v735_v33 = vmul.f32 %v3627_v22, %v4401_v40  ;;  %v2323_v20 = vld [vmem:[#allocation11] sm:$0xff] }
 0x178   :  { %3321 = vmatmul.mubr.msk.f32.vlgmr.msra.gmra.mrb[12].mxu1 %vm183_vm1, %v729_v48  ;;  %3517 = vmatprep.subr.msk.bf16.mxu1 %vm4568_vm2, %v3515_v1  ;;  %v632_v18 = vpop.xlane.xlu0 %631  ;;  %3638 = vrsqrt.f32 %v677_v5  ;;  %v635_v12 = vpop.xlane.xlu1 %634 }
 0x179   :  { %v3629_v10 = vpop.eup %3628  ;;  %3520 = vmatpush3.bf16.xpose.msk.msra.mxu1 %vm4568_vm2, %v3515_v1  ;;  %3334 = vmatprep.mubr.msk.f32.mxu1 %vm183_vm1, %v732_v53  ;;  %v678_v30 = vmax.f32 %v632_v18, 1e-24  ;;  %v3521_v14 = vpack.c.bf16 %v735_v33, %v734_v4  ;;  %v679_v37 = vmax.f32 %v635_v12, 1e-24 }
 0x17a   :  { %v736_v15 = vmul.f32 %v3629_v10, %v4415_v52  ;;  %v3631_v17 = vpop.eup %3630 }
 0x17b   :  { %3640 = vrsqrt.f32 %v678_v30  ;;  %3523 = vmatprep.subr.msk.bf16.mxu0 %vm4568_vm2, %v3521_v14  ;;  %v737_v40 = vmul.f32 %v3631_v17, %v4423_v58  ;;  %v3058_v30 = vld [vmem:[%s5010_s11] ss:$0 sm:$0xff] }
 0x17c   :  { %v638_v41 = vpop.xlane.xlu0 %637  ;;  %3642 = vrsqrt.f32 %v679_v37  ;;  %v641_v45 = vpop.xlane.xlu1 %640 }
 0x17d   :  { %v3633_v29 = vpop.eup %3632  ;;  %v680_v24 = vmax.f32 %v638_v41, 1e-24  ;;  %v3527_v26 = vpack.c.bf16 %v737_v40, %v736_v15  ;;  %v681_v52 = vmax.f32 %v641_v45, 1e-24 }
 0x17e   :  { %3328 = vmatmul.mubr.msk.f32.vlgmr.msra.gmra.mrb[14].mxu0 %vm183_vm1, %v731_v46  ;;  %v738_v8 = vmul.f32 %v3633_v29, %v4442_v2  ;;  %v3635_v32 = vpop.eup %3634 }
 0x17f   :  { %3644 = vrsqrt.f32 %v680_v24  ;;  %3526 = vmatpush3.bf16.xpose.msk.msra.mxu0 %vm4568_vm2, %v3521_v14  ;;  %3341 = vmatprep.mubr.msk.f32.mxu0 %vm183_vm1, %v734_v4  ;;  %v739_v34 = vmul.f32 %v3635_v32, %v4450_v11  ;;  %v2327_v4 = vpack.c.bf16 %v2324_v63, %v2323_v20 }
 0x180   :  { %3335 = vmatmul.mubr.msk.f32.vlgmr.msra.gmra.mrb[14].mxu1 %vm183_vm1, %v733_v62  ;;  %3529 = vmatprep.subr.msk.bf16.mxu1 %vm4568_vm2, %v3527_v26  ;;  %v644_v58 = vpop.xlane.xlu0 %643  ;;  %3646 = vrsqrt.f32 %v681_v52  ;;  %v647_v23 = vpop.xlane.xlu1 %646 }
 0x181   :  { %v3637_v35 = vpop.eup %3636  ;;  %3532 = vmatpush3.bf16.xpose.msk.msra.mxu1 %vm4568_vm2, %v3527_v26  ;;  %3348 = vmatprep.mubr.msk.f32.mxu1 %vm183_vm1, %v736_v15  ;;  %v682_v2 = vmax.f32 %v644_v58, 1e-24  ;;  %v3533_v48 = vpack.c.bf16 %v739_v34, %v738_v8  ;;  %v683_v39 = vmax.f32 %v647_v23, 1e-24 }
 0x182   :  { %v740_v38 = vmul.f32 %v3637_v35, %v4457_v16  ;;  %v3639_v25 = vpop.eup %3638 }
 0x183   :  { %3648 = vrsqrt.f32 %v682_v2  ;;  %3535 = vmatprep.subr.msk.bf16.mxu0 %vm4568_vm2, %v3533_v48  ;;  %v741_v11 = vmul.f32 %v3639_v25, %v4468_v31 }
 0x184   :  { %v650_v42 = vpop.xlane.xlu0 %649  ;;  %3650 = vrsqrt.f32 %v683_v39  ;;  %v653_v51 = vpop.xlane.xlu1 %652 }
 0x185   :  { %v3641_v44 = vpop.eup %3640  ;;  %v684_v21 = vmax.f32 %v650_v42, 1e-24  ;;  %v3539_v54 = vpack.c.bf16 %v741_v11, %v740_v38  ;;  %v685_v16 = vmax.f32 %v653_v51, 1e-24 }
 0x186   :  { %3342 = vmatmul.mubr.msk.f32.vlgmr.msra.gmra.mrb[16].mxu0 %vm183_vm1, %v735_v33  ;;  %v742_v46 = vmul.f32 %v3641_v44, %v4484_v36  ;;  %v3643_v49 = vpop.eup %3642 }
 0x187   :  { %3652 = vrsqrt.f32 %v684_v21  ;;  %3538 = vmatpush3.bf16.xpose.msk.msra.mxu0 %vm4568_vm2, %v3533_v48  ;;  %3355 = vmatprep.mubr.msk.f32.mxu0 %vm183_vm1, %v738_v8  ;;  %v743_v31 = vmul.f32 %v3643_v49, %v4490_v43 }
 0x188   :  { %3349 = vmatmul.mubr.msk.f32.vlgmr.msra.gmra.mrb[16].mxu1 %vm183_vm1, %v737_v40  ;;  %3541 = vmatprep.subr.msk.bf16.mxu1 %vm4568_vm2, %v3539_v54  ;;  %3654 = vrsqrt.f32 %v685_v16 }
 0x189   :  { %v3645_v57 = vpop.eup %3644  ;;  %3544 = vmatpush3.bf16.xpose.msk.msra.mxu1 %vm4568_vm2, %v3539_v54  ;;  %3362 = vmatprep.mubr.msk.f32.mxu1 %vm183_vm1, %v740_v38  ;;  %v3545_v36 = vpack.c.bf16 %v743_v31, %v742_v46 }
 0x18a   :  { %v744_v50 = vmul.f32 %v3645_v57, %v4496_v47  ;;  %v3647_v27 = vpop.eup %3646 }
 0x18b   :  { %3547 = vmatprep.subr.msk.bf16.mxu0 %vm4568_vm2, %v3545_v36  ;;  %v745_v53 = vmul.f32 %v3647_v27, %v4503_v13 }
 0x18d   :  { %v3649_v55 = vpop.eup %3648  ;;  %v3551_v43 = vpack.c.bf16 %v745_v53, %v744_v50 }
 0x18e   :  { %3356 = vmatmul.mubr.msk.f32.vlgmr.msra.gmra.mrb[18].mxu0 %vm183_vm1, %v739_v34  ;;  %v746_v59 = vmul.f32 %v3649_v55, %v4509_v56  ;;  %v3651_v60 = vpop.eup %3650 }
 0x18f   :  { %3550 = vmatpush3.bf16.xpose.msk.msra.mxu0 %vm4568_vm2, %v3545_v36  ;;  %3369 = vmatprep.mubr.msk.f32.mxu0 %vm183_vm1, %v742_v46  ;;  %v747_v47 = vmul.f32 %v3651_v60, %v4515_v61 }
 0x190   :  { %3363 = vmatmul.mubr.msk.f32.vlgmr.msra.gmra.mrb[18].mxu1 %vm183_vm1, %v741_v11  ;;  %3553 = vmatprep.subr.msk.bf16.mxu1 %vm4568_vm2, %v3551_v43 }
 0x191   :  { %v3653_v13 = vpop.eup %3652  ;;  %3556 = vmatpush3.bf16.xpose.msk.msra.mxu1 %vm4568_vm2, %v3551_v43  ;;  %3376 = vmatprep.mubr.msk.f32.mxu1 %vm183_vm1, %v744_v50  ;;  %v3557_v56 = vpack.c.bf16 %v747_v47, %v746_v59 }
 0x192   :  { %v748_v62 = vmul.f32 %v3653_v13, %v4521_v0  ;;  %v3655_v28 = vpop.eup %3654  ;;  %v2325_v0 = vld [vmem:[#allocation11 + $0x10] sm:$0xff] }
 0x193   :  { %3559 = vmatprep.subr.msk.bf16.mxu0 %vm4568_vm2, %v3557_v56  ;;  %v749_v1 = vmul.f32 %v3655_v28, %v4527_v9  ;;  %v2326_v9 = vld [vmem:[#allocation11 + $0x18] sm:$0xff] }
 0x194   :  { %v2328_v22 = vpack.c.bf16 %v2326_v9, %v2325_v0 }
 0x195   :  { %v3563_v61 = vpack.c.bf16 %v749_v1, %v748_v62  ;;  %v314_v19 = vpop.f32.mrb[0].mxu1 }
 0x196   :  { %3370 = vmatmul.mubr.msk.f32.vlgmr.msra.gmra.mrb[20].mxu0 %vm183_vm1, %v743_v31  ;;  %v3271_v5 = vpop.f32.mrb[1].mxu1 }
 0x197   :  { %3562 = vmatpush3.bf16.xpose.msk.msra.mxu0 %vm4568_vm2, %v3557_v56  ;;  %3383 = vmatprep.mubr.msk.f32.mxu0 %vm183_vm1, %v746_v59  ;;  %v317_v18 = vpop.f32.mrb[2].mxu1 }
 0x198   :  { %3377 = vmatmul.mubr.msk.f32.vlgmr.msra.gmra.mrb[20].mxu1 %vm183_vm1, %v745_v53  ;;  %3565 = vmatprep.subr.msk.bf16.mxu1 %vm4568_vm2, %v3563_v61  ;;  %v3272_v33 = vpop.f32.mrb[3].mxu1 }
 0x199   :  { %3568 = vmatpush3.bf16.xpose.msk.msra.mxu1 %vm4568_vm2, %v3563_v61  ;;  %3390 = vmatprep.mubr.msk.f32.mxu1 %vm183_vm1, %v748_v62 }
 0x19a   :  { %3393 = vmatprep.subr.bf16.mxu0 %v2327_v4  ;;  %3405 = vmatprep.subr.bf16.mxu1 %v3987_v3 }
 0x19e   :  { %3384 = vmatmul.mubr.msk.f32.vlgmr.msra.gmra.mrb[22].mxu0 %vm183_vm1, %v747_v47 }
 0x19f   :  { %3394 = vmatpush3.bf16.msra.mxu0 %v2327_v4  ;;  %v357_v10 = vpop.f32.mrb[4].mxu1 }
 0x1a0   :  { %3391 = vmatmul.mubr.msk.f32.vlgmr.msra.gmra.mrb[22].mxu1 %vm183_vm1, %v749_v1  ;;  %3395 = vmatprep.subr.bf16.mxu0 %v2328_v22  ;;  %v358_v12 = vadd.f32 %v357_v10, %v314_v19  ;;  %v3279_v14 = vpop.f32.mrb[5].mxu1 }
 0x1a1   :  { %3407 = vmatprep.mubr.msk.bf16.mxu1 %vm3988_vm0, %v3987_v3  ;;  %v360_v15 = vpop.f32.mrb[6].mxu1  ;;  %v3259_v41 = vpop.f32.mrb[0].mxu0 }
 0x1a2   :  { %v370_v17 = vadd.f32 %v3058_v30, %v358_v12  ;;  %v3280_v37 = vpop.f32.mrb[7].mxu1  ;;  %v230_v29 = vpop.f32.mrb[1].mxu0  ;;  %v3124_v15 = vld [vmem:[#allocation8] ss:$0 sm:$0xff] }
 0x1a3   :  { %3396 = vmatpush3.bf16.msra.mxu0 %v2328_v22  ;;  %v3260_v24 = vpop.f32.mrb[2].mxu0 }
 0x1a4   :  { %3423 = vmatprep.subr.bf16.mxu0 %v3987_v3  ;;  %v378_v40 = vrot.slane %v370_v17, %v4232_v6  ;;  %v233_v8 = vpop.f32.mrb[3].mxu0 }
 0x1a6   :  { %v379_v45 = vcombine.high %v378_v40, %v378_v40  ;;  %v386_v26 = vrot.slane %v378_v40, %v4232_v6 }
 0x1a8   :  { %v393_v32 = vrot.slane %v379_v45, %v4232_v6  ;;  %v399_v52 = vrot.slane %v386_v26, %v4234_v7  ;;  %v394_v58 = vcombine.high %v386_v26, %v386_v26 }
 0x1a9   :  { %v3263_v48 = vpop.f32.mrb[4].mxu0 }
 0x1aa   :  { %v403_v34 = vrot.slane %v393_v32, %v4234_v7  ;;  %v416_v35 = vadd.f32 %v399_v52, %v230_v29  ;;  %v417_v2 = vadd.f32 %v399_v52, %v233_v8  ;;  %v395_v23 = vcombine.high %v393_v32, %v393_v32  ;;  %v246_v44 = vpop.f32.mrb[5].mxu0 }
 0x1ab   :  { %v407_v38 = vrot.slane %v394_v58, %v4234_v7  ;;  %v3264_v6 = vpop.f32.mrb[6].mxu0 }
 0x1ac   :  { %v418_v25 = vadd.f32 %v3259_v41, %v403_v34  ;;  %v424_v39 = vmax.f32 %v416_v35, 0.0  ;;  %v419_v42 = vadd.f32 %v3260_v24, %v403_v34  ;;  %v425_v11 = vmax.f32 %v417_v2, 0.0  ;;  %v249_v16 = vpop.f32.mrb[7].mxu0  ;;  %v2163_v41 = vpop.permute.xlu1 %2162 }
 0x1ad   :  { %v411_v21 = vrot.slane %v395_v23, %v4234_v7  ;;  %v420_v51 = vadd.f32 %v407_v38, %v246_v44  ;;  %v421_v50 = vadd.f32 %v407_v38, %v249_v16  ;;  %v2158_v24 = vpop.permute.xlu0 %2157 }
 0x1ae   :  { %v426_v54 = vmax.f32 %v418_v25, 0.0  ;;  %432 = vst.msk [vmem:[#allocation16] sm:$0xff] %vm183_vm1, %v424_v39  ;;  %v427_v46 = vmax.f32 %v419_v42, 0.0  ;;  %433 = vst.msk [vmem:[#allocation16 + $0x8] sm:$0xff] %vm183_vm1, %v425_v11  ;;  %v2319_v49 = vpack.c.bf16 %v425_v11, %v424_v39 }
 0x1af   :  { %v422_v31 = vadd.f32 %v3263_v48, %v411_v21  ;;  %v428_v57 = vmax.f32 %v420_v51, 0.0  ;;  %v423_v36 = vadd.f32 %v3264_v6, %v411_v21  ;;  %v429_v55 = vmax.f32 %v421_v50, 0.0 }
 0x1b0   :  { %434 = vst.msk [vmem:[#allocation16 + $0x10] sm:$0xff] %vm183_vm1, %v426_v54  ;;  %435 = vst.msk [vmem:[#allocation16 + $0x18] sm:$0xff] %vm183_vm1, %v427_v46  ;;  %v2320_v27 = vpack.c.bf16 %v427_v46, %v426_v54  ;;  %3397 = vmatprep.mubr.msk.bf16.mxu0 %vm183_vm1, %v2319_v49  ;;  %v2168_v49 = vpop.permute.xlu1 %2167 }
 0x1b1   :  { %v430_v7 = vmax.f32 %v422_v31, 0.0  ;;  %436 = vst.msk [vmem:[#allocation16 + $0x20] sm:$0xff] %vm183_vm1, %v428_v57  ;;  %v431_v53 = vmax.f32 %v423_v36, 0.0  ;;  %437 = vst.msk [vmem:[#allocation16 + $0x28] sm:$0xff] %vm183_vm1, %v429_v55  ;;  %v2321_v59 = vpack.c.bf16 %v429_v55, %v428_v57 }
 0x1b2   :  { %3398 = vmatmul.mubr.msk.bf16.vlgmr.msra.gmra.mrb[24].mxu0 %vm183_vm1, %v2320_v27  ;;  %v3125_v27 = vld [vmem:[#allocation8 + $0x1] ss:$0 sm:$0xff] }
 0x1b3   :  { %438 = vst.msk [vmem:[#allocation16 + $0x30] sm:$0xff] %vm183_vm1, %v430_v7  ;;  %439 = vst.msk [vmem:[#allocation16 + $0x38] sm:$0xff] %vm183_vm1, %v431_v53  ;;  %v2322_v43 = vpack.c.bf16 %v431_v53, %v430_v7  ;;  %3401 = vmatprep.mubr.msk.bf16.mxu0 %vm183_vm1, %v2321_v59 }
 0x1ba   :  { %3402 = vmatmul.mubr.msk.bf16.gmra.mrb[28].mxu0 %vm183_vm1, %v2322_v43 }
 0x1bb   :  { %3425 = vmatprep.mubr.msk.bf16.mxu0 %vm3988_vm0, %v3987_v3 }
 0x239   :  { %v3287_v60 = vpop.f32.mrb[8].mxu0 }
 0x23a   :  { %v822_v47 = vpop.f32.mrb[9].mxu0  ;;  %v2054_v56 = vsel %vm2046_vm3, %v3287_v60, 0.0  ;;  %v2173_v60 = vpop.permute.xlu1 %2172 }
 0x23b   :  { %v3294_v13 = vpop.f32.mrb[8].mxu1  ;;  %v2047_v20 = vsel %vm2046_vm3, %v822_v47, 0.0 }
 0x23c   :  { %v2055_v62 = vsel %vm2046_vm3, %v3294_v13, 0.0  ;;  %v903_v28 = vpop.f32.mrb[9].mxu1 }
 0x23d   :  { %v2056_v63 = vadd.f32 %v2055_v62, %v2054_v56  ;;  %v2048_v1 = vsel %vm2046_vm3, %v903_v28, 0.0 }
 0x23e   :  { %v2049_v61 = vadd.f32 %v2048_v1, %v2047_v20 }
 0x241   :  { %v3301_v4 = vpop.f32.mrb[10].mxu0 }
 0x242   :  { %v2057_v0 = vsel %vm2046_vm3, %v3301_v4, 0.0  ;;  %v984_v9 = vpop.f32.mrb[11].mxu0 }
 0x243   :  { %v2058_v22 = vadd.f32 %v2057_v0, %v2056_v63  ;;  %v2050_v19 = vsel %vm2046_vm3, %v984_v9, 0.0  ;;  %v3308_v5 = vpop.f32.mrb[10].mxu1 }
 0x244   :  { %v2051_v18 = vadd.f32 %v2050_v19, %v2049_v61  ;;  %v2059_v33 = vsel %vm2046_vm3, %v3308_v5, 0.0  ;;  %v1065_v10 = vpop.f32.mrb[11].mxu1 }
 0x245   :  { %v2060_v30 = vadd.f32 %v2059_v33, %v2058_v22  ;;  %v2052_v12 = vsel %vm2046_vm3, %v1065_v10, 0.0 }
 0x246   :  { %v2053_v14 = vadd.f32 %v2052_v12, %v2051_v18 }
 0x247   :  { %v2104_v17 = vmul.f32 0.25, %v2060_v30 }
 0x248   :  { %v2103_v37 = vmul.f32 0.25, %v2053_v14 }
 0x249   :  { %v3315_v40 = vpop.f32.mrb[12].mxu0  ;;  %v2140_v29 = vmul.f32 %v3124_v15, %v2104_v17  ;;  %v2178_v17 = vpop.permute.xlu1 %2177 }
 0x24a   :  { %v1146_v45 = vpop.f32.mrb[13].mxu0  ;;  %v2139_v26 = vmul.f32 %v3124_v15, %v2103_v37  ;;  %v2068_v52 = vsel %vm2046_vm3, %v3315_v40, 0.0 }
 0x24b   :  { %v2196_v8 = vmul.f32 %v2163_v41, %v2140_v29  ;;  %v3322_v32 = vpop.f32.mrb[12].mxu1  ;;  %v2061_v2 = vsel %vm2046_vm3, %v1146_v45, 0.0  ;;  %v3126_v45 = vld [vmem:[#allocation8 + $0x2] ss:$0 sm:$0xff] }
 0x24c   :  { %v2195_v58 = vmul.f32 %v2158_v24, %v2139_v26  ;;  %v2069_v34 = vsel %vm2046_vm3, %v3322_v32, 0.0  ;;  %v1227_v35 = vpop.f32.mrb[13].mxu1 }
 0x24d   :  { %vm2204_vm4 = vcmp.gt.f32.partialorder %v2196_v8, 0.0  ;;  %v2070_v23 = vadd.f32 %v2069_v34, %v2068_v52  ;;  %v2062_v48 = vsel %vm2046_vm3, %v1227_v35, 0.0  ;;  %v2183_v34 = vpop.permute.xlu1 %2182 }
 0x24e   :  { %v4735_v38 = vsel %vm2204_vm4, %v2196_v8, 0.0  ;;  %vm2203_vm5 = vcmp.gt.f32.partialorder %v2195_v58, 0.0  ;;  %v2063_v25 = vadd.f32 %v2062_v48, %v2061_v2 }
 0x24f   :  { %2220 = vst.msk [vmem:[#allocation17 + $0x8] sm:$0xff] %vm2046_vm3, %v4735_v38  ;;  %v4739_v39 = vsel %vm2203_vm5, %v2195_v58, 0.0  ;;  %v2230_v42 = vsel %vm2046_vm3, %v4735_v38, 0.0 }
 0x250   :  { %2219 = vst.msk [vmem:[#allocation17] sm:$0xff] %vm2046_vm3, %v4739_v39  ;;  %2231 = vadd.xlane.f32.xlu0 %v2230_v42  ;;  %v2227_v11 = vsel %vm2046_vm3, %v4739_v39, 0.0 }
 0x251   :  { %2228 = vadd.xlane.f32.xlu1 %v2227_v11  ;;  %v3329_v44 = vpop.f32.mrb[14].mxu0 }
 0x252   :  { %v2071_v21 = vsel %vm2046_vm3, %v3329_v44, 0.0  ;;  %v1308_v51 = vpop.f32.mrb[15].mxu0 }
 0x253   :  { %v2072_v6 = vadd.f32 %v2071_v21, %v2070_v23  ;;  %v2064_v54 = vsel %vm2046_vm3, %v1308_v51, 0.0  ;;  %v3336_v46 = vpop.f32.mrb[14].mxu1 }
 0x254   :  { %v2065_v16 = vadd.f32 %v2064_v54, %v2063_v25  ;;  %v2073_v31 = vsel %vm2046_vm3, %v3336_v46, 0.0  ;;  %v1389_v57 = vpop.f32.mrb[15].mxu1 }
 0x255   :  { %v2074_v36 = vadd.f32 %v2073_v31, %v2072_v6  ;;  %v2066_v50 = vsel %vm2046_vm3, %v1389_v57, 0.0 }
 0x256   :  { %v2067_v7 = vadd.f32 %v2066_v50, %v2065_v16 }
 0x257   :  { %v2106_v53 = vmul.f32 0.25, %v2074_v36 }
 0x258   :  { %v2105_v55 = vmul.f32 0.25, %v2067_v7 }
 0x259   :  { %v2142_v43 = vmul.f32 %v3125_v27, %v2106_v53  ;;  %v3343_v59 = vpop.f32.mrb[16].mxu0 }
 0x25a   :  { %v2141_v47 = vmul.f32 %v3125_v27, %v2105_v55  ;;  %v1470_v13 = vpop.f32.mrb[17].mxu0  ;;  %v2082_v28 = vsel %vm2046_vm3, %v3343_v59, 0.0  ;;  %v2188_v55 = vpop.permute.xlu1 %2187 }
 0x25b   :  { %v3350_v56 = vpop.f32.mrb[16].mxu1  ;;  %v2198_v62 = vmul.f32 %v2173_v60, %v2142_v43  ;;  %v2075_v61 = vsel %vm2046_vm3, %v1470_v13, 0.0 }
 0x25c   :  { %v2083_v20 = vsel %vm2046_vm3, %v3350_v56, 0.0  ;;  %v1551_v63 = vpop.f32.mrb[17].mxu1  ;;  %v2197_v1 = vmul.f32 %v2168_v49, %v2141_v47  ;;  %v3127_v56 = vld [vmem:[#allocation8 + $0x3] ss:$0 sm:$0xff] }
 0x25d   :  { %v2084_v4 = vadd.f32 %v2083_v20, %v2082_v28  ;;  %v2076_v0 = vsel %vm2046_vm3, %v1551_v63, 0.0  ;;  %vm2206_vm6 = vcmp.gt.f32.partialorder %v2198_v62, 0.0 }
 0x25e   :  { %v2077_v9 = vadd.f32 %v2076_v0, %v2075_v61  ;;  %v4755_v22 = vsel %vm2206_vm6, %v2198_v62, 0.0  ;;  %vm2205_vm7 = vcmp.gt.f32.partialorder %v2197_v1, 0.0 }
 0x25f   :  { %v2236_v19 = vsel %vm2046_vm3, %v4755_v22, 0.0  ;;  %2222 = vst.msk [vmem:[#allocation17 + $0x18] sm:$0xff] %vm2046_vm3, %v4755_v22  ;;  %v4761_v5 = vsel %vm2205_vm7, %v2197_v1, 0.0  ;;  %v2193_v1 = vpop.permute.xlu1 %2192 }
 0x260   :  { %2237 = vadd.xlane.f32.xlu1 %v2236_v19  ;;  %v2233_v18 = vsel %vm2046_vm3, %v4761_v5, 0.0  ;;  %2221 = vst.msk [vmem:[#allocation17 + $0x10] sm:$0xff] %vm2046_vm3, %v4761_v5 }
 0x261   :  { %2234 = vadd.xlane.f32.xlu0 %v2233_v18  ;;  %v3357_v33 = vpop.f32.mrb[18].mxu0 }
 0x262   :  { %v2085_v10 = vsel %vm2046_vm3, %v3357_v33, 0.0  ;;  %v1632_v30 = vpop.f32.mrb[19].mxu0 }
 0x263   :  { %v2086_v12 = vadd.f32 %v2085_v10, %v2084_v4  ;;  %v2078_v14 = vsel %vm2046_vm3, %v1632_v30, 0.0  ;;  %v3364_v15 = vpop.f32.mrb[18].mxu1 }
 0x264   :  { %v2079_v37 = vadd.f32 %v2078_v14, %v2077_v9  ;;  %v2087_v41 = vsel %vm2046_vm3, %v3364_v15, 0.0  ;;  %v1713_v40 = vpop.f32.mrb[19].mxu1 }
 0x265   :  { %v2088_v29 = vadd.f32 %v2087_v41, %v2086_v12  ;;  %v2080_v24 = vsel %vm2046_vm3, %v1713_v40, 0.0 }
 0x266   :  { %v2081_v26 = vadd.f32 %v2080_v24, %v2079_v37 }
 0x267   :  { %v2108_v8 = vmul.f32 0.25, %v2088_v29 }
 0x268   :  { %v2107_v32 = vmul.f32 0.25, %v2081_v26 }
 0x269   :  { %v2144_v52 = vmul.f32 %v3126_v45, %v2108_v8  ;;  %v3371_v58 = vpop.f32.mrb[20].mxu0 }
 0x26a   :  { %v2143_v35 = vmul.f32 %v3126_v45, %v2107_v32  ;;  %v1794_v2 = vpop.f32.mrb[21].mxu0  ;;  %v2096_v25 = vsel %vm2046_vm3, %v3371_v58, 0.0  ;;  %v2260_v58 = vld [vmem:[%s5006_s7 + $0x8] sm:$0xff] }
 0x26b   :  { %v3378_v23 = vpop.f32.mrb[20].mxu1  ;;  %v2200_v48 = vmul.f32 %v2183_v34, %v2144_v52  ;;  %v2089_v21 = vsel %vm2046_vm3, %v1794_v2, 0.0  ;;  %v2259_v34 = vld [vmem:[%s5006_s7] sm:$0xff] }
 0x26c   :  { %v2097_v42 = vsel %vm2046_vm3, %v3378_v23, 0.0  ;;  %v1875_v11 = vpop.f32.mrb[21].mxu1  ;;  %v2199_v44 = vmul.f32 %v2178_v17, %v2143_v35 }
 0x26d   :  { %v2098_v51 = vadd.f32 %v2097_v42, %v2096_v25  ;;  %v2090_v6 = vsel %vm2046_vm3, %v1875_v11, 0.0  ;;  %vm2208_vm8 = vcmp.gt.f32.partialorder %v2200_v48, 0.0  ;;  %v2267_v42 = vmul.f32 0.7, %v2259_v34 }
 0x26e   :  { %v2091_v54 = vadd.f32 %v2090_v6, %v2089_v21  ;;  %v4775_v46 = vsel %vm2208_vm8, %v2200_v48, 0.0  ;;  %vm2207_vm9 = vcmp.gt.f32.partialorder %v2199_v44, 0.0  ;;  %v2268_v48 = vmul.f32 0.7, %v2260_v58 }
 0x26f   :  { %v2242_v49 = vsel %vm2046_vm3, %v4775_v46, 0.0  ;;  %2224 = vst.msk [vmem:[#allocation17 + $0x28] sm:$0xff] %vm2046_vm3, %v4775_v46  ;;  %v4781_v16 = vsel %vm2207_vm9, %v2199_v44, 0.0 }
 0x270   :  { %2243 = vadd.xlane.f32.xlu1 %v2242_v49  ;;  %v2239_v31 = vsel %vm2046_vm3, %v4781_v16, 0.0  ;;  %2223 = vst.msk [vmem:[#allocation17 + $0x20] sm:$0xff] %vm2046_vm3, %v4781_v16 }
 0x271   :  { %2240 = vadd.xlane.f32.xlu0 %v2239_v31  ;;  %v3385_v57 = vpop.f32.mrb[22].mxu0 }
 0x272   :  { %v2099_v36 = vsel %vm2046_vm3, %v3385_v57, 0.0  ;;  %v1956_v50 = vpop.f32.mrb[23].mxu0 }
 0x273   :  { %v2100_v27 = vadd.f32 %v2099_v36, %v2098_v51  ;;  %v2092_v7 = vsel %vm2046_vm3, %v1956_v50, 0.0  ;;  %v3392_v53 = vpop.f32.mrb[22].mxu1 }
 0x274   :  { %v2093_v43 = vadd.f32 %v2092_v7, %v2091_v54  ;;  %v2101_v59 = vsel %vm2046_vm3, %v3392_v53, 0.0  ;;  %v2037_v60 = vpop.f32.mrb[23].mxu1 }
 0x275   :  { %v2102_v47 = vadd.f32 %v2101_v59, %v2100_v27  ;;  %v2094_v13 = vsel %vm2046_vm3, %v2037_v60, 0.0 }
 0x276   :  { %v2095_v62 = vadd.f32 %v2094_v13, %v2093_v43 }
 0x277   :  { %v2110_v28 = vmul.f32 0.25, %v2102_v47 }
 0x278   :  { %v2109_v20 = vmul.f32 0.25, %v2095_v62 }
 0x279   :  { %v2146_v63 = vmul.f32 %v3127_v56, %v2110_v28 }
 0x27a   :  { %v2145_v61 = vmul.f32 %v3127_v56, %v2109_v20 }
 0x27b   :  { %v2202_v4 = vmul.f32 %v2193_v1, %v2146_v63 }
 0x27c   :  { %v2201_v0 = vmul.f32 %v2188_v55, %v2145_v61 }
 0x27d   :  { %vm2210_vm10 = vcmp.gt.f32.partialorder %v2202_v4, 0.0 }
 0x27e   :  { %v4791_v9 = vsel %vm2210_vm10, %v2202_v4, 0.0  ;;  %vm2209_vm11 = vcmp.gt.f32.partialorder %v2201_v0, 0.0 }
 0x27f   :  { %v2248_v19 = vsel %vm2046_vm3, %v4791_v9, 0.0  ;;  %2226 = vst.msk [vmem:[#allocation17 + $0x38] sm:$0xff] %vm2046_vm3, %v4791_v9  ;;  %v4797_v18 = vsel %vm2209_vm11, %v2201_v0, 0.0 }
 0x280   :  { %2249 = vadd.xlane.f32.xlu1 %v2248_v19  ;;  %v2245_v33 = vsel %vm2046_vm3, %v4797_v18, 0.0  ;;  %2225 = vst.msk [vmem:[#allocation17 + $0x30] sm:$0xff] %vm2046_vm3, %v4797_v18 }
 0x281   :  { %2246 = vadd.xlane.f32.xlu0 %v2245_v33 }
 0x285   :  { %v3399_v10 = vpop.f32.mrb[24].mxu0 }
 0x286   :  { %v2375_v30 = vpop.f32.mrb[25].mxu0 }
 0x287   :  { %v3400_v12 = vpop.f32.mrb[26].mxu0 }
 0x288   :  { %v2407_v14 = vpack.c.bf16 %v3400_v12, %v3399_v10  ;;  %v2378_v15 = vpop.f32.mrb[27].mxu0 }
 0x289   :  { %v2406_v17 = vpack.c.bf16 %v2378_v15, %v2375_v30 }
 0x28b   :  { %3406 = vmatpush3.bf16.msra.mxu1 %v2406_v17 }
 0x28c   :  { %3411 = vmatprep.subr.bf16.mxu1 %v3987_v3 }
 0x28d   :  { %v3403_v37 = vpop.f32.mrb[28].mxu0 }
 0x28e   :  { %v2391_v41 = vpop.f32.mrb[29].mxu0 }
 0x28f   :  { %v3404_v40 = vpop.f32.mrb[30].mxu0 }
 0x290   :  { %v2409_v29 = vpack.c.bf16 %v3404_v40, %v3403_v37  ;;  %v2394_v24 = vpop.f32.mrb[31].mxu0 }
 0x291   :  { %v2408_v45 = vpack.c.bf16 %v2394_v24, %v2391_v41 }
 0x292   :  { %3424 = vmatpush3.bf16.msra.mxu0 %v2409_v29 }
 0x293   :  { %3441 = vmatprep.subr.bf16.mxu0 %v3987_v3 }
 0x2dd   :  { %v2232_v26 = vpop.xlane.xlu0 %2231 }
 0x2de   :  { %v2252_v8 = vmax.f32 %v2232_v26, 1e-12  ;;  %v2229_v32 = vpop.xlane.xlu1 %2228 }
 0x2df   :  { %v2251_v52 = vmax.f32 %v2229_v32, 1e-12 }
 0x2e0   :  { %3656 = vrcp.f32 %v2252_v8 }
 0x2e1   :  { %3658 = vrcp.f32 %v2251_v52 }
 0x2ea   :  { %v3657_v35 = vpop.eup %3656 }
 0x2eb   :  { %v3659_v2 = vpop.eup %3658  ;;  %v2278_v23 = vmul.f32 %v3657_v35, %v4735_v38  ;;  %v2262_v38 = vld [vmem:[%s5006_s7 + $0x18] sm:$0xff] }
 0x2ec   :  { %v2276_v25 = vmul.f32 %v3659_v2, %v4739_v39  ;;  %v2261_v39 = vld [vmem:[%s5006_s7 + $0x10] sm:$0xff]  ;;  %v2270_v7 = vmul.f32 0.7, %v2262_v38  ;;  %v2599_v2 = vld [vmem:[#allocation13 + $0x8] sm:$0xff] }
 0x2ed   :  { %v2292_v11 = vmul.f32 0.3, %v2278_v23  ;;  %v2238_v44 = vpop.xlane.xlu1 %2237  ;;  %v2269_v55 = vmul.f32 0.7, %v2261_v39 }
 0x2ee   :  { %v2291_v21 = vmul.f32 0.3, %v2276_v25  ;;  %v2254_v51 = vmax.f32 %v2238_v44, 1e-12  ;;  %v2235_v6 = vpop.xlane.xlu0 %2234 }
 0x2ef   :  { %v2253_v54 = vmax.f32 %v2235_v6, 1e-12  ;;  %v2300_v49 = vadd.f32 %v2292_v11, %v2268_v48  ;;  %v2601_v48 = vld [vmem:[#allocation13 + $0x18] sm:$0xff] }
 0x2f0   :  { %3660 = vrcp.f32 %v2254_v51  ;;  %v2299_v31 = vadd.f32 %v2291_v21, %v2267_v42 }
 0x2f1   :  { %3662 = vrcp.f32 %v2253_v54  ;;  %2308 = vst.msk [vmem:[#allocation19 + $0x8] sm:$0xff] %vm2046_vm3, %v2300_v49 }
 0x2f2   :  { %2307 = vst.msk [vmem:[#allocation19] sm:$0xff] %vm2046_vm3, %v2299_v31  ;;  %v4815_v57 = vpack.c.bf16 %v2300_v49, %v2299_v31 }
 0x2f4   :  { %3408 = vmatmul.mubr.msk.bf16.vlgmr.msra.gmra.mrb[24].mxu1 %vm2046_vm3, %v4815_v57 }
 0x2f5   :  { %3412 = vmatpush3.bf16.msra.mxu1 %v2407_v14  ;;  %3413 = vmatprep.mubr.msk.bf16.mxu1 %vm3988_vm0, %v3987_v3 }
 0x2f6   :  { %3417 = vmatprep.subr.bf16.mxu1 %v3987_v3 }
 0x2fa   :  { %v3661_v36 = vpop.eup %3660 }
 0x2fb   :  { %v3663_v50 = vpop.eup %3662  ;;  %v2282_v27 = vmul.f32 %v3661_v36, %v4755_v22  ;;  %v2264_v22 = vld [vmem:[%s5006_s7 + $0x28] sm:$0xff] }
 0x2fc   :  { %v2280_v53 = vmul.f32 %v3663_v50, %v4761_v5  ;;  %v2263_v5 = vld [vmem:[%s5006_s7 + $0x20] sm:$0xff]  ;;  %v2272_v4 = vmul.f32 0.7, %v2264_v22 }
 0x2fd   :  { %v2294_v43 = vmul.f32 0.3, %v2282_v27  ;;  %v2244_v59 = vpop.xlane.xlu1 %2243  ;;  %v2271_v19 = vmul.f32 0.7, %v2263_v5 }
 0x2fe   :  { %v2293_v60 = vmul.f32 0.3, %v2280_v53  ;;  %v2256_v47 = vmax.f32 %v2244_v59, 1e-12  ;;  %v2241_v13 = vpop.xlane.xlu0 %2240 }
 0x2ff   :  { %v2255_v56 = vmax.f32 %v2241_v13, 1e-12  ;;  %v2302_v62 = vadd.f32 %v2294_v43, %v2270_v7 }
 0x300   :  { %3664 = vrcp.f32 %v2256_v47  ;;  %v2301_v28 = vadd.f32 %v2293_v60, %v2269_v55 }
 0x301   :  { %3666 = vrcp.f32 %v2255_v56  ;;  %2310 = vst.msk [vmem:[#allocation19 + $0x18] sm:$0xff] %vm2046_vm3, %v2302_v62 }
 0x302   :  { %2309 = vst.msk [vmem:[#allocation19 + $0x10] sm:$0xff] %vm2046_vm3, %v2301_v28  ;;  %v4832_v20 = vpack.c.bf16 %v2302_v62, %v2301_v28 }
 0x304   :  { %3414 = vmatmul.mubr.msk.bf16.vlgmr.msra.gmra.mrb[28].mxu1 %vm2046_vm3, %v4832_v20 }
 0x305   :  { %3418 = vmatpush3.bf16.msra.mxu1 %v2408_v45  ;;  %3419 = vmatprep.mubr.msk.bf16.mxu1 %vm3988_vm0, %v3987_v3 }
 0x30a   :  { %v3665_v63 = vpop.eup %3664 }
 0x30b   :  { %v3667_v1 = vpop.eup %3666  ;;  %v2286_v61 = vmul.f32 %v3665_v63, %v4775_v46  ;;  %v2266_v46 = vld [vmem:[%s5006_s7 + $0x38] sm:$0xff] }
 0x30c   :  { %v2284_v0 = vmul.f32 %v3667_v1, %v4781_v16  ;;  %v2265_v16 = vld [vmem:[%s5006_s7 + $0x30] sm:$0xff]  ;;  %v2274_v24 = vmul.f32 0.7, %v2266_v46  ;;  %v2899_v46 = vld [vmem:[#allocation14 + $0x10] sm:$0xff]  ;;  %s3990_s7 = smov [#allocation17]  }
 0x30d   :  { %v2296_v33 = vmul.f32 0.3, %v2286_v61  ;;  %v2250_v10 = vpop.xlane.xlu1 %2249  ;;  %v2273_v26 = vmul.f32 0.7, %v2265_v16  ;;  %v2900_v16 = vld [vmem:[#allocation14 + $0x18] sm:$0xff]  ;;  %s2988_s0 = sshll.u32 %s3990_s7, 4  ;;  %s2989_s0 = int_to_ptr.vmem [resolvable:$true] %s2988_s0 }
 0x30e   :  { %v2295_v30 = vmul.f32 0.3, %v2284_v0  ;;  %v2258_v12 = vmax.f32 %v2250_v10, 1e-12  ;;  %v2247_v14 = vpop.xlane.xlu0 %2246  ;;  %s3848_s10 = scalar_lea.vmem %s2989_s0, 1024  ;;  %p3853_p9 = scmp.lt.s32.totalorder %s2989_s0, %s2989_s0 }
 0x30f   :  { %v2257_v15 = vmax.f32 %v2247_v14, 1e-12  ;;  %v2304_v17 = vadd.f32 %v2296_v33, %v2272_v4  ;;  %p3849_p8 = scmp.ne.s32.totalorder %s2989_s0, %s3848_s10  ;;  %p3854_p10 = scmp.lt.s32.totalorder %s3848_s10, %s3848_s10 }
 0x310   :  { %3668 = vrcp.f32 %v2258_v12  ;;  %v2303_v37 = vadd.f32 %v2295_v30, %v2271_v19 }
 0x311   :  { %3670 = vrcp.f32 %v2257_v15  ;;  %2312 = vst.msk [vmem:[#allocation19 + $0x28] sm:$0xff] %vm2046_vm3, %v2304_v17  ;;  %p3855_p11 = por %p3854_p10, %p3853_p9 }
 0x312   :  { %2311 = vst.msk [vmem:[#allocation19 + $0x20] sm:$0xff] %vm2046_vm3, %v2303_v37  ;;  %v4848_v41 = vpack.c.bf16 %v2304_v17, %v2303_v37 }
 0x313   :  { %p3856_p12 = pnand %p3855_p11, %p3849_p8 }
 0x314   :  { %3420 = vmatmul.mubr.msk.bf16.vlgmr.msra.gmra.mrb[32].mxu1 %vm2046_vm3, %v4848_v41 }
 0x31a   :  { %v3669_v40 = vpop.eup %3668 }
 0x31b   :  { %v3671_v29 = vpop.eup %3670  ;;  %v2290_v45 = vmul.f32 %v3669_v40, %v4791_v9  ;;  %v2598_v9 = vld [vmem:[#allocation13] sm:$0xff]  ;;  %v2902_v40 = vpack.c.bf16 %v2900_v16, %v2899_v46 }
 0x31c   :  { %v2288_v8 = vmul.f32 %v3671_v29, %v4797_v18  ;;  %v2602_v23 = vpack.c.bf16 %v2599_v2, %v2598_v9  ;;  %v2600_v18 = vld [vmem:[#allocation13 + $0x10] sm:$0xff] }
 0x31d   :  { %v2298_v32 = vmul.f32 0.3, %v2290_v45  ;;  %v2603_v25 = vpack.c.bf16 %v2601_v48, %v2600_v18 }
 0x31e   :  { %v2297_v52 = vmul.f32 0.3, %v2288_v8  ;;  %3429 = vmatprep.subr.bf16.mxu1 %v2602_v23 }
 0x31f   :  { %v2306_v58 = vadd.f32 %v2298_v32, %v2274_v24  ;;  %3430 = vmatpush3.bf16.msra.mxu1 %v2602_v23 }
 0x320   :  { %v2305_v34 = vadd.f32 %v2297_v52, %v2273_v26  ;;  %3431 = vmatprep.subr.bf16.mxu1 %v2603_v25 }
 0x321   :  { %2314 = vst.msk [vmem:[#allocation19 + $0x38] sm:$0xff] %vm2046_vm3, %v2306_v58 }
 0x322   :  { %2313 = vst.msk [vmem:[#allocation19 + $0x30] sm:$0xff] %vm2046_vm3, %v2305_v34  ;;  %v4862_v35 = vpack.c.bf16 %v2306_v58, %v2305_v34 }
 0x323   :  { %3432 = vmatpush3.bf16.msra.mxu1 %v2603_v25 }
 0x324   :  { %3426 = vmatmul.mubr.msk.bf16.vlgmr.msra.gmra.mrb[32].mxu0 %vm2046_vm3, %v4862_v35  ;;  %3453 = vmatprep.subr.bf16.mxu1 %v3987_v3 }
 0x325   :  { %3443 = vmatprep.mubr.msk.bf16.mxu0 %vm3988_vm0, %v3987_v3 }
 0x3c7   :  { %v2447_v42 = vpop.f32.mrb[24].mxu1 }
 0x3c8   :  { %v3409_v11 = vpop.f32.mrb[25].mxu1  ;;  %v2586_v21 = vmax.f32 %v2447_v42, 0.0 }
 0x3c9   :  { %v2450_v44 = vpop.f32.mrb[26].mxu1 }
 0x3ca   :  { %v2587_v51 = vmax.f32 %v2450_v44, 0.0  ;;  %v3410_v6 = vpop.f32.mrb[27].mxu1 }
 0x3cc   :  { %v2594_v54 = vpack.c.bf16 %v2587_v51, %v2586_v21 }
 0x3ce   :  { %3433 = vmatprep.mubr.msk.bf16.mxu1 %vm183_vm1, %v2594_v54 }
 0x3d7   :  { %v2491_v49 = vpop.f32.mrb[28].mxu1 }
 0x3d8   :  { %v3415_v31 = vpop.f32.mrb[29].mxu1  ;;  %v2588_v39 = vmax.f32 %v2491_v49, 0.0 }
 0x3d9   :  { %v2494_v38 = vpop.f32.mrb[30].mxu1 }
 0x3da   :  { %v2589_v36 = vmax.f32 %v2494_v38, 0.0  ;;  %v3416_v50 = vpop.f32.mrb[31].mxu1 }
 0x3dc   :  { %v2595_v27 = vpack.c.bf16 %v2589_v36, %v2588_v39 }
 0x3de   :  { %3434 = vmatmul.mubr.msk.bf16.vlgmr.msra.gmra.mrb[36].mxu1 %vm183_vm1, %v2595_v27 }
 0x3e7   :  { %v2535_v7 = vpop.f32.mrb[32].mxu1 }
 0x3e8   :  { %v3421_v53 = vpop.f32.mrb[33].mxu1  ;;  %v2590_v43 = vmax.f32 %v2535_v7, 0.0 }
 0x3e9   :  { %v2538_v55 = vpop.f32.mrb[34].mxu1 }
 0x3ea   :  { %v2591_v59 = vmax.f32 %v2538_v55, 0.0  ;;  %v3422_v60 = vpop.f32.mrb[35].mxu1 }
 0x3ec   :  { %v2596_v47 = vpack.c.bf16 %v2591_v59, %v2590_v43 }
 0x3ee   :  { %3437 = vmatprep.mubr.msk.bf16.mxu1 %vm183_vm1, %v2596_v47 }
 0x3f7   :  { %v2579_v13 = vpop.f32.mrb[32].mxu0 }
 0x3f8   :  { %v3427_v56 = vpop.f32.mrb[33].mxu0  ;;  %v2592_v28 = vmax.f32 %v2579_v13, 0.0 }
 0x3f9   :  { %v2582_v62 = vpop.f32.mrb[34].mxu0 }
 0x3fa   :  { %v2593_v22 = vmax.f32 %v2582_v62, 0.0  ;;  %v3428_v5 = vpop.f32.mrb[35].mxu0 }
 0x3fc   :  { %v2597_v63 = vpack.c.bf16 %v2593_v22, %v2592_v28 }
 0x3fe   :  { %3438 = vmatmul.mubr.msk.bf16.gmra.mrb[40].mxu1 %vm183_vm1, %v2597_v63 }
 0x3ff   :  { %3455 = vmatprep.mubr.msk.bf16.mxu1 %vm3988_vm0, %v3987_v3 }
 0x4b1   :  { %v3435_v1 = vpop.f32.mrb[36].mxu1 }
 0x4b2   :  { %v2650_v61 = vpop.f32.mrb[37].mxu1 }
 0x4b3   :  { %v3436_v4 = vpop.f32.mrb[38].mxu1 }
 0x4b4   :  { %v2682_v0 = vpack.c.bf16 %v3436_v4, %v3435_v1  ;;  %v2653_v19 = vpop.f32.mrb[39].mxu1 }
 0x4b5   :  { %v2681_v33 = vpack.c.bf16 %v2653_v19, %v2650_v61 }
 0x4b7   :  { %3442 = vmatpush3.bf16.msra.mxu0 %v2681_v33 }
 0x4b8   :  { %3447 = vmatprep.subr.bf16.mxu0 %v3987_v3 }
 0x4ba   :  { %3444 = vmatmul.mubr.msk.bf16.vlgmr.msra.gmra.mrb[36].mxu0 %vm2046_vm3, %v4815_v57  ;;  %v2897_v57 = vld [vmem:[#allocation14] sm:$0xff] }
 0x4bb   :  { %3448 = vmatpush3.bf16.msra.mxu0 %v2682_v0  ;;  %3449 = vmatprep.mubr.msk.bf16.mxu0 %vm3988_vm0, %v3987_v3 }
 0x4bc   :  { %3459 = vmatprep.subr.bf16.mxu0 %v3987_v3 }
 0x4c2   :  { %3450 = vmatmul.mubr.msk.bf16.vlgmr.msra.gmra.mrb[40].mxu0 %vm2046_vm3, %v4832_v20  ;;  %v2898_v20 = vld [vmem:[#allocation14 + $0x8] sm:$0xff] }
 0x4c3   :  { %3461 = vmatprep.mubr.msk.bf16.mxu0 %vm3988_vm0, %v3987_v3  ;;  %v2901_v37 = vpack.c.bf16 %v2898_v20, %v2897_v57 }
 0x4d1   :  { %v3439_v10 = vpop.f32.mrb[40].mxu1 }
 0x4d2   :  { %v2666_v30 = vpop.f32.mrb[41].mxu1 }
 0x4d3   :  { %v3440_v12 = vpop.f32.mrb[42].mxu1 }
 0x4d4   :  { %v2684_v14 = vpack.c.bf16 %v3440_v12, %v3439_v10  ;;  %v2669_v15 = vpop.f32.mrb[43].mxu1 }
 0x4d5   :  { %v2683_v17 = vpack.c.bf16 %v2669_v15, %v2666_v30 }
 0x4d6   :  { %3460 = vmatpush3.bf16.msra.mxu0 %v2684_v14 }
 0x4d7   :  { %3454 = vmatpush3.bf16.msra.mxu1 %v2683_v17 }
 0x4d8   :  { %3465 = vmatprep.subr.bf16.mxu1 %v3987_v3 }
 0x4d9   :  { %3462 = vmatmul.mubr.msk.bf16.vlgmr.msra.gmra.mrb[44].mxu0 %vm2046_vm3, %v4862_v35 }
 0x4da   :  { %3456 = vmatmul.mubr.msk.bf16.vlgmr.msra.gmra.mrb[44].mxu1 %vm2046_vm3, %v4848_v41 }
 0x4db   :  { %3469 = vmatprep.mubr.msk.bf16.mxu1 %vm3988_vm0, %v3987_v3  ;;  %3466 = vmatpush3.bf16.msra.mxu1 %v2901_v37 }
 0x4dc   :  { %3467 = vmatprep.subr.bf16.mxu1 %v3987_v3 }
 0x4df   :  { %3468 = vmatpush3.bf16.msra.mxu1 %v2902_v40 }
 0x58d   :  { %v2719_v29 = vpop.f32.mrb[36].mxu0 }
 0x58e   :  { %2849 = vst.msk [vmem:[#allocation20] sm:$0xff] %vm183_vm1, %v2719_v29  ;;  %v3445_v24 = vpop.f32.mrb[37].mxu0  ;;  %v2857_v41 = vsel %vm183_vm1, %v2719_v29, -inf }
 0x58f   :  { %v2722_v45 = vpop.f32.mrb[38].mxu0 }
 0x590   :  { %2850 = vst.msk [vmem:[#allocation20 + $0x8] sm:$0xff] %vm183_vm1, %v2722_v45  ;;  %v2858_v26 = vsel %vm183_vm1, %v2722_v45, -inf  ;;  %v3446_v8 = vpop.f32.mrb[39].mxu0 }
 0x591   :  { %v2859_v32 = vmax.f32 %v2857_v41, %v2858_v26 }
 0x593   :  { %v2860_v52 = vrot.slane %v2859_v32, 4 }
 0x595   :  { %v2861_v58 = vmax.f32 %v2859_v32, %v2860_v52  ;;  %v2760_v3 = vpop.f32.mrb[40].mxu0 }
 0x596   :  { %2851 = vst.msk [vmem:[#allocation20 + $0x10] sm:$0xff] %vm183_vm1, %v2760_v3  ;;  %v3451_v34 = vpop.f32.mrb[41].mxu0  ;;  %v2866_v2 = vsel %vm183_vm1, %v2760_v3, -inf }
 0x597   :  { %v2862_v35 = vrot.slane %v2861_v58, 2  ;;  %v2763_v9 = vpop.f32.mrb[42].mxu0 }
 0x598   :  { %2852 = vst.msk [vmem:[#allocation20 + $0x18] sm:$0xff] %vm183_vm1, %v2763_v9  ;;  %v2867_v23 = vsel %vm183_vm1, %v2763_v9, -inf  ;;  %v3452_v18 = vpop.f32.mrb[43].mxu0 }
 0x599   :  { %v2863_v48 = vmax.f32 %v2861_v58, %v2862_v35  ;;  %v2868_v25 = vmax.f32 %v2866_v2, %v2867_v23 }
 0x59b   :  { %v2869_v42 = vrot.slane %v2868_v25, 4  ;;  %v2864_v11 = vrot.slane %v2863_v48, 1 }
 0x59d   :  { %v2870_v44 = vmax.f32 %v2868_v25, %v2869_v42  ;;  %v2865_v51 = vmax.f32 %v2863_v48, %v2864_v11 }
 0x59f   :  { %v2871_v21 = vrot.slane %v2870_v44, 2  ;;  %v2893_v49 = vpack.c.bf16 %v2865_v51, %v2865_v51 }
 0x5a1   :  { %v2872_v6 = vmax.f32 %v2870_v44, %v2871_v21  ;;  %v2914_v39 = vunpack.c.l.b16 %v2893_v49 }
 0x5a3   :  { %v2873_v54 = vrot.slane %v2872_v6, 1 }
 0x5a5   :  { %v2874_v31 = vmax.f32 %v2872_v6, %v2873_v54 }
 0x5a7   :  { %v2894_v38 = vpack.c.bf16 %v2874_v31, %v2874_v31 }
 0x5a9   :  { %v2915_v36 = vunpack.c.l.b16 %v2894_v38 }
 0x5ab   :  { %v2919_v50 = vsel %vm2918_vm12, %v2915_v36, %v2914_v39 }
 0x5ac   :  { %v2842_v27 = vpop.f32.mrb[44].mxu0 }
 0x5ad   :  { %2855 = vst.msk [vmem:[#allocation20 + $0x30] sm:$0xff] %vm183_vm1, %v2842_v27  ;;  %v2801_v7 = vpop.f32.mrb[44].mxu1  ;;  %v3463_v53 = vpop.f32.mrb[45].mxu0  ;;  %v2884_v59 = vsel %vm183_vm1, %v2842_v27, -inf }
 0x5ae   :  { %2853 = vst.msk [vmem:[#allocation20 + $0x20] sm:$0xff] %vm183_vm1, %v2801_v7  ;;  %v3457_v55 = vpop.f32.mrb[45].mxu1  ;;  %v2845_v43 = vpop.f32.mrb[46].mxu0  ;;  %v2875_v56 = vsel %vm183_vm1, %v2801_v7, -inf }
 0x5af   :  { %2856 = vst.msk [vmem:[#allocation20 + $0x38] sm:$0xff] %vm183_vm1, %v2845_v43  ;;  %v2885_v60 = vsel %vm183_vm1, %v2845_v43, -inf  ;;  %v2804_v47 = vpop.f32.mrb[46].mxu1  ;;  %v3464_v13 = vpop.f32.mrb[47].mxu0 }
 0x5b0   :  { %v2886_v62 = vmax.f32 %v2884_v59, %v2885_v60  ;;  %2854 = vst.msk [vmem:[#allocation20 + $0x28] sm:$0xff] %vm183_vm1, %v2804_v47  ;;  %v2876_v28 = vsel %vm183_vm1, %v2804_v47, -inf  ;;  %v3458_v22 = vpop.f32.mrb[47].mxu1 }
 0x5b1   :  { %v2877_v5 = vmax.f32 %v2875_v56, %v2876_v28 }
 0x5b2   :  { %v2887_v63 = vrot.slane %v2886_v62, 4 }
 0x5b3   :  { %v2878_v1 = vrot.slane %v2877_v5, 4 }
 0x5b4   :  { %v2888_v61 = vmax.f32 %v2886_v62, %v2887_v63 }
 0x5b5   :  { %v2879_v4 = vmax.f32 %v2877_v5, %v2878_v1 }
 0x5b6   :  { %v2889_v0 = vrot.slane %v2888_v61, 2 }
 0x5b7   :  { %v2880_v19 = vrot.slane %v2879_v4, 2 }
 0x5b8   :  { %v2890_v33 = vmax.f32 %v2888_v61, %v2889_v0 }
 0x5b9   :  { %v2881_v10 = vmax.f32 %v2879_v4, %v2880_v19 }
 0x5ba   :  { %v2891_v30 = vrot.slane %v2890_v33, 1 }
 0x5bb   :  { %v2882_v12 = vrot.slane %v2881_v10, 1 }
 0x5bc   :  { %v2892_v14 = vmax.f32 %v2890_v33, %v2891_v30 }
 0x5bd   :  { %v2883_v15 = vmax.f32 %v2881_v10, %v2882_v12 }
 0x5be   :  { %v2896_v17 = vpack.c.bf16 %v2892_v14, %v2892_v14 }
 0x5bf   :  { %v2895_v57 = vpack.c.bf16 %v2883_v15, %v2883_v15 }
 0x5c0   :  { %v2917_v37 = vunpack.c.l.b16 %v2896_v17 }
 0x5c1   :  { %v2916_v20 = vunpack.c.l.b16 %v2895_v57 }
 0x5c3   :  { %v2921_v46 = vsel %vm2920_vm13, %v2916_v20, %v2919_v50 }
 0x5c4   :  { %v2923_v16 = vsel %vm2922_vm14, %v2917_v37, %v2921_v46 }
 0x5c5   :  { %v2924_v40 = vpack.c.b16 %v2923_v16, %v2923_v16 }
 0x5c7   :  { %3470 = vmatmul.mubr.msk.bf16.vlgmr.msra.gmra.mrb[48].mxu1 %vm183_vm1, %v2924_v40 }
 0x5c8   :  { %3859 = shalt.err (!%p3856_p12)
}
 0x5c9   :  { %s3860_s25 = scalar_lea.hbm %s5016_s17, 1024 }
 0x5ca   :  { %p3861_p13 = scmp.ne.s32.totalorder %s5016_s17, %s3860_s25  ;;  %p3864_p0 = scmp.lt.u32.totalorder %s3860_s25, %s5016_s17 }
 0x5cc   :  { %p3866_p1 = pnand %p3864_p0, %p3861_p13 }
 0x5ce   :  { %3869 = shalt.err (!%p3866_p1)
}
 0x5cf   :  { %2994 = dma.vmem_to_hbm [thread:$0]  %s2989_s0, 1024, %s5016_s17, [#allocation18], %s3980_s24, %s3980_s24, %s3981_s22  }
 0x5d0   :  { %s3870_s20 = scalar_lea.vmem %s4910_s2, 1024  ;;  %p3875_p3 = scmp.lt.s32.totalorder %s4910_s2, %s4910_s2 }
 0x5d1   :  { %p3871_p2 = scmp.ne.s32.totalorder %s4910_s2, %s3870_s20  ;;  %p3876_p4 = scmp.lt.s32.totalorder %s3870_s20, %s3870_s20 }
 0x5d3   :  { %p3877_p5 = por %p3876_p4, %p3875_p3 }
 0x5d5   :  { %p3878_p6 = pnand %p3877_p5, %p3871_p2 }
 0x5d7   :  { %3881 = shalt.err (!%p3878_p6)
}
 0x5d8   :  { %s3882_s21 = scalar_lea.hbm %s5018_s19, 1024 }
 0x5d9   :  { %p3883_p7 = scmp.ne.s32.totalorder %s5018_s19, %s3882_s21  ;;  %p3886_p8 = scmp.lt.u32.totalorder %s3882_s21, %s5018_s19 }
 0x5db   :  { %p3888_p9 = pnand %p3886_p8, %p3883_p7 }
 0x5dd   :  { %3891 = shalt.err (!%p3888_p9)
}
 0x5de   :  { %3018 = dma.vmem_to_hbm [thread:$0]  %s4910_s2, 1024, %s5018_s19, [#allocation21], %s3980_s24, %s3980_s24, %s3981_s22  }
 0x5df   :  { %s3992_s14 = smov [#allocation16]   ;;  %s3993_s0 = smov [#allocation19]  }
 0x5e0   :  { %s2976_s7 = sshll.u32 %s3992_s14, 4  ;;  %s3000_s30 = sshll.u32 %s3993_s0, 4  ;;  %s2977_s7 = int_to_ptr.vmem [resolvable:$true] %s2976_s7  ;;  %s4947_s30 = int_to_ptr.vmem [resolvable:$true] %s3000_s30 }
 0x5e1   :  { %s3892_s10 = scalar_lea.vmem %s2977_s7, 1024  ;;  %p3897_p11 = scmp.lt.s32.totalorder %s2977_s7, %s2977_s7 }
 0x5e2   :  { %p3893_p10 = scmp.ne.s32.totalorder %s2977_s7, %s3892_s10  ;;  %p3898_p12 = scmp.lt.s32.totalorder %s3892_s10, %s3892_s10 }
 0x5e4   :  { %p3899_p13 = por %p3898_p12, %p3897_p11 }
 0x5e6   :  { %p3900_p0 = pnand %p3899_p13, %p3893_p10 }
 0x5e8   :  { %3903 = shalt.err (!%p3900_p0)
}
 0x5e9   :  { %s3904_s25 = scalar_lea.hbm %s5015_s16, 1024 }
 0x5ea   :  { %p3905_p1 = scmp.ne.s32.totalorder %s5015_s16, %s3904_s25  ;;  %p3908_p2 = scmp.lt.u32.totalorder %s3904_s25, %s5015_s16 }
 0x5ec   :  { %p3910_p3 = pnand %p3908_p2, %p3905_p1 }
 0x5ee   :  { %3913 = shalt.err (!%p3910_p3)
}
 0x5ef   :  { %2982 = dma.vmem_to_hbm [thread:$0]  %s2977_s7, 1024, %s5015_s16, [#allocation4], %s3980_s24, %s3980_s24, %s3981_s22  }
 0x5f0   :  { %s3914_s26 = scalar_lea.vmem %s4947_s30, 1024  ;;  %p3919_p5 = scmp.lt.s32.totalorder %s4947_s30, %s4947_s30 }
 0x5f1   :  { %p3915_p4 = scmp.ne.s32.totalorder %s4947_s30, %s3914_s26  ;;  %p3920_p6 = scmp.lt.s32.totalorder %s3914_s26, %s3914_s26 }
 0x5f3   :  { %p3921_p7 = por %p3920_p6, %p3919_p5 }
 0x5f5   :  { %p3922_p8 = pnand %p3921_p7, %p3915_p4 }
 0x5f7   :  { %3925 = shalt.err (!%p3922_p8)
}
 0x5f8   :  { %s3926_s23 = scalar_lea.hbm %s5017_s18, 1024 }
 0x5f9   :  { %p3927_p9 = scmp.ne.s32.totalorder %s5017_s18, %s3926_s23  ;;  %p3930_p10 = scmp.lt.u32.totalorder %s3926_s23, %s5017_s18 }
 0x5fb   :  { %p3932_p11 = pnand %p3930_p10, %p3927_p9 }
 0x5fd   :  { %3935 = shalt.err (!%p3932_p11)
}
 0x5fe   :  { %3006 = dma.vmem_to_hbm [thread:$0]  %s4947_s30, 1024, %s5017_s18, [#allocation18], %s3980_s24, %s3980_s24, %s3981_s22   ;;  %vm2969_vm15 = vcmask 257024  }
 0x5ff   :  { %v3144_v29 = vld [vmem:[%s5014_s15] ss:$0 sm:$0xff]  ;;  %s3994_s28 = smov [#allocation22]  }
 0x600   :  { %s3025_s14 = sshll.u32 %s3994_s28, 4  ;;  %s3026_s14 = int_to_ptr.vmem [resolvable:$true] %s3025_s14 }
 0x601   :  { %s3936_s7 = scalar_lea.vmem %s3026_s14, 64  ;;  %p3941_p13 = scmp.lt.s32.totalorder %s3026_s14, %s3026_s14 }
 0x602   :  { %p3937_p12 = scmp.ne.s32.totalorder %s3026_s14, %s3936_s7  ;;  %p3942_p0 = scmp.lt.s32.totalorder %s3936_s7, %s3936_s7 }
 0x604   :  { %p3943_p1 = por %p3942_p0, %p3941_p13 }
 0x606   :  { %p3944_p2 = pnand %p3943_p1, %p3937_p12 }
 0x69a   :  { %v2962_v24 = vpop.f32.mrb[48].mxu1 }
 0x69b   :  { %v2963_v45 = vadd.f32 %v3144_v29, %v2962_v24  ;;  %v3471_v41 = vpop.f32.mrb[49].mxu1 }
 0x69c   :  { %v2965_v26 = vpop.f32.mrb[50].mxu1 }
 0x69d   :  { %v2968_v8 = vmax.f32 %v2963_v45, 0.0  ;;  %v3472_v32 = vpop.f32.mrb[51].mxu1 }
 0x69f   :  { %2970 = vst.msk [vmem:[#allocation22] sm:$0xf] %vm2969_vm15, %v2968_v8 }
 0x6a0   :  { %3947 = shalt.err (!%p3944_p2)
}
 0x6a1   :  { %s5039_s24 = sld [smem:[#allocation36_spill]] }
 0x6a7   :  { %s3948_s22 = scalar_lea.hbm %s5039_s24, 64 }
 0x6a8   :  { %p3949_p3 = scmp.ne.s32.totalorder %s5039_s24, %s3948_s22  ;;  %p3952_p4 = scmp.lt.u32.totalorder %s3948_s22, %s5039_s24 }
 0x6aa   :  { %p3954_p5 = pnand %p3952_p4, %p3949_p3 }
 0x6ac   :  { %3957 = shalt.err (!%p3954_p5)
}
 0x6ad   :  { %3028 = dma.vmem_to_hbm [thread:$0]  %s3026_s14, 64, %s5039_s24, [#allocation21]  }
 0x6ae   :  { %3968 = dma.done.wait [#allocation4], 1024  }
 0x6af   :  { %3969 = vsyncadd [#allocation4], 4294966272 }
 0x6b0   :  { %3970 = dma.done.wait [#allocation18], 2048  }
 0x6b1   :  { %3971 = vsyncadd [#allocation18], 4294965248 }
 0x6b2   :  { %3972 = dma.done.wait [#allocation21], 1088  }
 0x6b3   :  { %3973 = vsyncadd [#allocation21], 4294966208 }
 0x6b4   :  { %3044 = vsyncpa [#allocation3], 1 }
 0x6b5   :  { %3045 = vsyncpa [#allocation6], 1 }
 0x6b6   :  { %3046 = vsyncpa [#allocation9], 1 }
 0x6b7   :  { %3047 = vsyncpa [#allocation12], 1 }
 0x6b8   :  { %3048 = vsyncpa [#allocation15], 1 }
 0x6b9   :  { %3049 = vsyncpa [#allocation4], 1 }
 0x6ba   :  { %3050 = vsyncpa [#allocation18], 1 }
 0x6bb   :  { %3051 = vsyncpa [#allocation21], 1 }

</bundles_post_ra>
